<compile_context>
chip_gen: v7x
topology: tpu7x:2x2x1
jax: 0.10.0
libtpu: 0.0.40
codegen_flags: <defaults>
</compile_context>

<pallas_src>
import functools

import jax
import jax.numpy as jnp
from jax.experimental import pallas as pl
from jax.experimental.pallas import tpu as pltpu

BN_EPS = 1e-5
LANE = 128


def _round_up(n, m):
    return (n + m - 1) // m * m


# -----------------------------------------------------------------------------
# Kernel: Linear -> [ReLU -> Linear] * n_bn -> Linear -> sigmoid
# (eval-mode BatchNorm folded into the preceding Linear; dropout = identity.)
# -----------------------------------------------------------------------------
def _mlp_kernel(n_bn, x_ref, *refs):
    o_ref = refs[-1]
    p = refs[:-1]

    def dot_bias(h, w_ref, b_ref):
        w = w_ref[...]
        # Cast activations to the (bf16 by default) weight dtype; accumulate f32.
        return jnp.dot(h.astype(w.dtype), w,
                       preferred_element_type=jnp.float32) + b_ref[...]

    h = dot_bias(x_ref[...], p[0], p[1])          # self.layer (BN0 folded in)
    idx = 2
    for _ in range(n_bn):                         # hidden blocks
        h = jnp.maximum(h, 0.0)                   # ReLU (BN folded, dropout = id)
        h = dot_bias(h, p[idx], p[idx + 1])
        idx += 2
    if idx < len(p):                              # hidden_layers[-1] (arch non-empty)
        h = dot_bias(h, p[idx], p[idx + 1])
    o_ref[...] = jax.nn.sigmoid(h).astype(o_ref.dtype)


# -----------------------------------------------------------------------------
# Wrapper-level parameter preparation: BN folding + lane-dense zero padding.
# -----------------------------------------------------------------------------
def prepare_params(params, architecture, input_size, output_size,
                   weight_dtype=jnp.bfloat16):
    """Fold eval-mode BN into the Linear whose output feeds it; zero-pad every
    feature dim except the raw input dim to a multiple of 128.
    Returns (flat [W, b, ...], padded_dims, n_bn)."""
    n_bn = max(len(architecture) - 1, 0)
    dims = [input_size] + list(architecture) + [output_size]
    # Input feature dim stays UNPADDED: x streams at its true width and the
    # first weight's K equals the full array dim (no (8,128) constraint).
    pdims = [input_size] + [_round_up(d, LANE) for d in dims[1:]]

    # Unpack PyTorch-style param list into per-linear (W, b) and per-BN stats.
    linears = [(params[0], params[1])]            # self.layer
    idx = 2
    bns = []
    for _ in range(n_bn):
        bns.append(tuple(params[idx:idx + 4]))    # gamma, beta, mean, var
        idx += 4
        linears.append((params[idx], params[idx + 1]))
        idx += 2
    if architecture:
        linears.append((params[idx], params[idx + 1]))  # hidden_layers[-1]

    # Fold BN_i into linear i (the one whose output BN_i normalizes).
    folded = []
    for i, (w, b) in enumerate(linears):
        if i < n_bn:
            gamma, beta, mean, var = bns[i]
            scale = gamma * jax.lax.rsqrt(var + BN_EPS)   # (1, F)
            w = w * scale
            b = (b - mean) * scale + beta
        folded.append((w, b))

    # Zero-pad to lane-dense shapes; biases stay f32 (elementwise path in f32).
    flat = []
    for i, (w, b) in enumerate(folded):
        pin, pout = pdims[i], pdims[i + 1]
        w = jnp.pad(w, ((0, pin - w.shape[0]), (0, pout - w.shape[1]))).astype(weight_dtype)
        b = jnp.pad(b, ((0, 0), (0, pout - b.shape[1]))).astype(jnp.float32)
        flat += [w, b]
    return flat, pdims, n_bn


def _vmem_budget_bytes():
    """Generation-aware usable VMEM (leave compiler/internal-scratch headroom)."""
    try:
        cap = int(pltpu.get_tpu_info().vmem_capacity_bytes)
    except Exception:
        cap = 64 << 20                       # conservative fallback
    if cap <= (64 << 20):                    # v7x: 64 MiB per TensorCore
        return cap - (12 << 20)              # ~52 MiB usable
    return min(cap - (20 << 20), 108 << 20)  # v5e/v6e: 128 MiB physical


# -----------------------------------------------------------------------------
# pallas_call wrapper: batch-tiled grid, resident (single-buffered) weights,
# lane-dense output tile.
# -----------------------------------------------------------------------------
def base_mlp_forward(x, flat_params, pdims, n_bn, output_size, *, batch_tile=512):
    b, in_features = x.shape
    assert in_features == pdims[0]
    out_pad = pdims[-1]
    max_pdim = max(pdims)

    param_bytes = sum(int(p.size) * p.dtype.itemsize for p in flat_params)
    usable = _vmem_budget_bytes()

    def tile_bytes(t):
        io = 2 * t * (in_features + out_pad) * 4      # double-buffered x / out tiles
        live = 2 * t * max_pdim * 4                   # live f32 activations in compute
        return io + live

    # Batch tile: as big as requested, but keep >= 2 grid steps when the batch
    # allows (v7x has two TensorCores sharing the "parallel" batch axis), and
    # shrink until the VMEM estimate fits the generation budget.
    tb = max(8, min(batch_tile, _round_up(b, 8)))
    if b > 8 and _round_up(b, tb) // tb < 2:
        tb = max(8, _round_up((b + 1) // 2, 8))
    while tb > 8 and param_bytes + tile_bytes(tb) > usable:
        tb = max(8, _round_up(tb // 2, 8))

    b_pad = _round_up(b, tb)
    x_pad = jnp.pad(x, ((0, b_pad - b), (0, 0))) if b_pad != b else x

    grid = (b_pad // tb,)
    out_spec = pl.BlockSpec((tb, out_pad), lambda i: (i, 0))
    out_shape = jax.ShapeDtypeStruct((b_pad, out_pad), x.dtype)

    vmem_limit = int(max(32 << 20,
                         min(int(1.25 * (param_bytes + tile_bytes(tb))) + (4 << 20),
                             usable)))

    def build_call(single_buffer_weights):
        # x streams per batch tile at its TRUE feature width (no wrapper-side
        # feature padding -> no inflation of the input DMA).
        in_specs = [pl.BlockSpec((tb, in_features), lambda i: (i, 0))]
        for p in flat_params:                        # grid-invariant params
            if single_buffer_weights:
                spec = pl.BlockSpec(p.shape, lambda i: (0, 0),
                                    pipeline_mode=pl.Buffered(1))
            else:
                spec = pl.BlockSpec(p.shape, lambda i: (0, 0))
            in_specs.append(spec)
        return pl.pallas_call(
            functools.partial(_mlp_kernel, n_bn),
            grid=grid,
            in_specs=in_specs,
            out_specs=out_spec,
            out_shape=out_shape,
            compiler_params=pltpu.CompilerParams(
                dimension_semantics=("parallel",),
                vmem_limit_bytes=vmem_limit,
            ),
        )

    try:
        # Preferred: single-buffer the invariant weights (halves their VMEM).
        out = build_call(True)(x_pad, *flat_params)
    except Exception:
        # Fallback (identical numerics): default double-buffered weight specs.
        out = build_call(False)(x_pad, *flat_params)

    # TODO(synk): a consumer accepting the padded (bf16) output could skip this
    # slice and roughly halve the output HBM writeback.
    return out[:b, :output_size]


# -----------------------------------------------------------------------------
# PyTorch-style parameter construction + pure-JAX reference.
# -----------------------------------------------------------------------------
def _linear_init(key, fan_in, fan_out):
    # nn.Linear default init: U(-1/sqrt(fan_in), 1/sqrt(fan_in)); W pre-transposed.
    k_w, k_b = jax.random.split(key)
    bound = 1.0 / float(fan_in) ** 0.5
    w = jax.random.uniform(k_w, (fan_in, fan_out), jnp.float32, -bound, bound)
    b = jax.random.uniform(k_b, (1, fan_out), jnp.float32, -bound, bound)
    return w, b


def init_params(key, input_size, output_size, architecture):
    assert len(architecture) > 0
    params = []
    keys = jax.random.split(key, 2 * len(architecture) + 2)

    w, b = _linear_init(keys[0], input_size, architecture[0])   # self.layer
    params += [w, b]

    for i in range(len(architecture) - 1):
        f = architecture[i]
        # Non-trivial eval-mode BN stats (as after training) to exercise the fold.
        kg, kb2, km, kv = jax.random.split(keys[len(architecture) + 1 + i], 4)
        params += [
            1.0 + 0.1 * jax.random.normal(kg, (1, f), jnp.float32),   # gamma
            0.1 * jax.random.normal(kb2, (1, f), jnp.float32),        # beta
            0.1 * jax.random.normal(km, (1, f), jnp.float32),         # running_mean
            jax.random.uniform(kv, (1, f), jnp.float32, 0.5, 1.5),    # running_var
        ]
        w, b = _linear_init(keys[i + 1], architecture[i], architecture[i + 1])
        params += [w, b]

    w, b = _linear_init(keys[len(architecture)], architecture[-1], output_size)
    params += [w, b]
    return params


def _reference_forward(x, params, n_bn):
    h = x @ params[0] + params[1]
    idx = 2
    for _ in range(n_bn):
        g, bt, m, v = params[idx], params[idx + 1], params[idx + 2], params[idx + 3]
        idx += 4
        h = (h - m) / jnp.sqrt(v + BN_EPS) * g + bt
        h = jnp.maximum(h, 0.0)
        h = h @ params[idx] + params[idx + 1]
        idx += 2
    h = h @ params[idx] + params[idx + 1]
    return jax.nn.sigmoid(h)


if __name__ == "__main__":
    key = jax.random.PRNGKey(0)
    k_x, k_p = jax.random.split(key)

    batch, input_size, output_size = 256, 32, 16
    architecture = [64, 48]
    n_bn = len(architecture) - 1

    x = jax.random.normal(k_x, (batch, input_size), jnp.float32)
    raw_params = init_params(k_p, input_size, output_size, architecture)
    expected = _reference_forward(x, raw_params, n_bn)

    # Default path: bf16 weights / bf16 MXU inputs with f32 accumulation.
    flat16, pdims, n_bn_f = prepare_params(raw_params, architecture, input_size,
                                           output_size)
    out16 = base_mlp_forward(x, flat16, pdims, n_bn_f, output_size)
    out16 = jax.block_until_ready(out16)
    assert out16.shape == (batch, output_size)
    assert jnp.allclose(out16, expected, atol=5e-2, rtol=0.0), "bf16 mismatch vs reference"

    # Debug path: f32 weights (exactness of BN fold + padding + batch tiling).
    flat32, pdims32, _ = prepare_params(raw_params, architecture, input_size,
                                        output_size, weight_dtype=jnp.float32)
    out32 = base_mlp_forward(x, flat32, pdims32, n_bn_f, output_size)
    out32 = jax.block_until_ready(out32)
    assert out32.shape == (batch, output_size)
    assert jnp.allclose(out32, expected, atol=1e-4, rtol=1e-4), "f32 mismatch vs reference"

    print("KERNEL_OK")
</pallas_src>

<mosaic_0001>
module attributes {stable_mosaic.version = 11 : i64} {
  func.func @_mlp_kernel(%arg0: i32, %arg1: memref<128x32xf32, #tpu.memory_space<vmem>>, %arg2: memref<32x128xbf16, #tpu.memory_space<vmem>>, %arg3: memref<1x128xf32, #tpu.memory_space<vmem>>, %arg4: memref<128x128xbf16, #tpu.memory_space<vmem>>, %arg5: memref<1x128xf32, #tpu.memory_space<vmem>>, %arg6: memref<128x128xbf16, #tpu.memory_space<vmem>>, %arg7: memref<1x128xf32, #tpu.memory_space<vmem>>, %arg8: memref<128x128xf32, #tpu.memory_space<vmem>>) attributes {dimension_semantics = [#tpu.dimension_semantics<parallel>], iteration_bounds = array<i64: 2>, scalar_prefetch = 0 : i64, scratch_operands = 0 : i64, tpu.core_type = #tpu.core_type<tc>, window_params = [{transform_indices = @transform_0, window_bounds = array<i64: 128, 32>}, {pipeline_mode = #tpu.pipeline_mode<synchronous>, transform_indices = @transform_1, window_bounds = array<i64: 32, 128>}, {pipeline_mode = #tpu.pipeline_mode<synchronous>, transform_indices = @transform_2, window_bounds = array<i64: 1, 128>}, {pipeline_mode = #tpu.pipeline_mode<synchronous>, transform_indices = @transform_3, window_bounds = array<i64: 128, 128>}, {pipeline_mode = #tpu.pipeline_mode<synchronous>, transform_indices = @transform_4, window_bounds = array<i64: 1, 128>}, {pipeline_mode = #tpu.pipeline_mode<synchronous>, transform_indices = @transform_5, window_bounds = array<i64: 128, 128>}, {pipeline_mode = #tpu.pipeline_mode<synchronous>, transform_indices = @transform_6, window_bounds = array<i64: 1, 128>}, {transform_indices = @transform_7, window_bounds = array<i64: 128, 128>}]} {
    %c0 = arith.constant 0 : index
    %c0_0 = arith.constant 0 : index
    %0 = vector.load %arg1[%c0, %c0_0] : memref<128x32xf32, #tpu.memory_space<vmem>>, vector<128x32xf32>
    %c0_1 = arith.constant 0 : index
    %c0_2 = arith.constant 0 : index
    %1 = vector.load %arg2[%c0_1, %c0_2] : memref<32x128xbf16, #tpu.memory_space<vmem>>, vector<32x128xbf16>
    %2 = arith.truncf %0 : vector<128x32xf32> to vector<128x32xbf16>
    %cst = arith.constant dense<0.000000e+00> : vector<128x128xf32>
    %3 = tpu.matmul %2, %1, %cst {dimension_numbers = #tpu.dot_dimension_numbers<[1], [0], [0], [1], [0, 0, 1, 1], [], []>} : vector<128x32xbf16>, vector<32x128xbf16>, vector<128x128xf32> -> vector<128x128xf32>
    %c0_3 = arith.constant 0 : index
    %c0_4 = arith.constant 0 : index
    %4 = vector.load %arg3[%c0_3, %c0_4] : memref<1x128xf32, #tpu.memory_space<vmem>>, vector<1x128xf32>
    %5 = vector.broadcast %4 : vector<1x128xf32> to vector<128x128xf32>
    %6 = arith.addf %3, %5 : vector<128x128xf32>
    %cst_5 = arith.constant 0.000000e+00 : f32
    %7 = vector.broadcast %cst_5 : f32 to vector<128x128xf32>
    %8 = arith.maximumf %6, %7 : vector<128x128xf32>
    %c0_6 = arith.constant 0 : index
    %c0_7 = arith.constant 0 : index
    %9 = vector.load %arg4[%c0_6, %c0_7] : memref<128x128xbf16, #tpu.memory_space<vmem>>, vector<128x128xbf16>
    %10 = arith.truncf %8 : vector<128x128xf32> to vector<128x128xbf16>
    %cst_8 = arith.constant dense<0.000000e+00> : vector<128x128xf32>
    %11 = tpu.matmul %10, %9, %cst_8 {dimension_numbers = #tpu.dot_dimension_numbers<[1], [0], [0], [1], [0, 0, 1, 1], [], []>} : vector<128x128xbf16>, vector<128x128xbf16>, vector<128x128xf32> -> vector<128x128xf32>
    %c0_9 = arith.constant 0 : index
    %c0_10 = arith.constant 0 : index
    %12 = vector.load %arg5[%c0_9, %c0_10] : memref<1x128xf32, #tpu.memory_space<vmem>>, vector<1x128xf32>
    %13 = vector.broadcast %12 : vector<1x128xf32> to vector<128x128xf32>
    %14 = arith.addf %11, %13 : vector<128x128xf32>
    %c0_11 = arith.constant 0 : index
    %c0_12 = arith.constant 0 : index
    %15 = vector.load %arg6[%c0_11, %c0_12] : memref<128x128xbf16, #tpu.memory_space<vmem>>, vector<128x128xbf16>
    %16 = arith.truncf %14 : vector<128x128xf32> to vector<128x128xbf16>
    %cst_13 = arith.constant dense<0.000000e+00> : vector<128x128xf32>
    %17 = tpu.matmul %16, %15, %cst_13 {dimension_numbers = #tpu.dot_dimension_numbers<[1], [0], [0], [1], [0, 0, 1, 1], [], []>} : vector<128x128xbf16>, vector<128x128xbf16>, vector<128x128xf32> -> vector<128x128xf32>
    %c0_14 = arith.constant 0 : index
    %c0_15 = arith.constant 0 : index
    %18 = vector.load %arg7[%c0_14, %c0_15] : memref<1x128xf32, #tpu.memory_space<vmem>>, vector<1x128xf32>
    %19 = vector.broadcast %18 : vector<1x128xf32> to vector<128x128xf32>
    %20 = arith.addf %17, %19 : vector<128x128xf32>
    %21 = arith.negf %20 : vector<128x128xf32>
    %22 = math.exp %21 : vector<128x128xf32>
    %cst_16 = arith.constant 1.000000e+00 : f32
    %23 = vector.broadcast %cst_16 : f32 to vector<128x128xf32>
    %24 = arith.addf %23, %22 : vector<128x128xf32>
    %25 = arith.divf %23, %24 : vector<128x128xf32>
    %c0_17 = arith.constant 0 : index
    %c0_18 = arith.constant 0 : index
    %26 = vector.load %arg8[%c0_17, %c0_18] : memref<128x128xf32, #tpu.memory_space<vmem>>, vector<128x128xf32>
    tpu.vector_store %arg8[%c0_17, %c0_18], %25 {strides = array<i32>} : memref<128x128xf32, #tpu.memory_space<vmem>>, vector<128x128xf32>,
    return
  }
  func.func @transform_0(%arg0: i32) -> (i32, i32) {
    %c0_i32 = arith.constant 0 : i32
    %c0_i32_0 = arith.constant 0 : i32
    return %arg0, %c0_i32 : i32, i32
  }
  func.func @transform_1(%arg0: i32) -> (i32, i32) {
    %c0_i32 = arith.constant 0 : i32
    %c0_i32_0 = arith.constant 0 : i32
    %c0_i32_1 = arith.constant 0 : i32
    return %c0_i32, %c0_i32_0 : i32, i32
  }
  func.func @transform_2(%arg0: i32) -> (i32, i32) {
    %c0_i32 = arith.constant 0 : i32
    %c0_i32_0 = arith.constant 0 : i32
    %c0_i32_1 = arith.constant 0 : i32
    return %c0_i32, %c0_i32_0 : i32, i32
  }
  func.func @transform_3(%arg0: i32) -> (i32, i32) {
    %c0_i32 = arith.constant 0 : i32
    %c0_i32_0 = arith.constant 0 : i32
    %c0_i32_1 = arith.constant 0 : i32
    return %c0_i32, %c0_i32_0 : i32, i32
  }
  func.func @transform_4(%arg0: i32) -> (i32, i32) {
    %c0_i32 = arith.constant 0 : i32
    %c0_i32_0 = arith.constant 0 : i32
    %c0_i32_1 = arith.constant 0 : i32
    return %c0_i32, %c0_i32_0 : i32, i32
  }
  func.func @transform_5(%arg0: i32) -> (i32, i32) {
    %c0_i32 = arith.constant 0 : i32
    %c0_i32_0 = arith.constant 0 : i32
    %c0_i32_1 = arith.constant 0 : i32
    return %c0_i32, %c0_i32_0 : i32, i32
  }
  func.func @transform_6(%arg0: i32) -> (i32, i32) {
    %c0_i32 = arith.constant 0 : i32
    %c0_i32_0 = arith.constant 0 : i32
    %c0_i32_1 = arith.constant 0 : i32
    return %c0_i32, %c0_i32_0 : i32, i32
  }
  func.func @transform_7(%arg0: i32) -> (i32, i32) {
    %c0_i32 = arith.constant 0 : i32
    %c0_i32_0 = arith.constant 0 : i32
    return %arg0, %c0_i32 : i32, i32
  }
}

module attributes {stable_mosaic.version = 11 : i64} {
  func.func @_mlp_kernel(%arg0: i32, %arg1: memref<128x32xf32, #tpu.memory_space<vmem>>, %arg2: memref<32x128xbf16, #tpu.memory_space<vmem>>, %arg3: memref<1x128xf32, #tpu.memory_space<vmem>>, %arg4: memref<128x128xbf16, #tpu.memory_space<vmem>>, %arg5: memref<1x128xf32, #tpu.memory_space<vmem>>, %arg6: memref<128x128xbf16, #tpu.memory_space<vmem>>, %arg7: memref<1x128xf32, #tpu.memory_space<vmem>>, %arg8: memref<128x128xf32, #tpu.memory_space<vmem>>) attributes {dimension_semantics = [#tpu.dimension_semantics<parallel>], iteration_bounds = array<i64: 2>, scalar_prefetch = 0 : i64, scratch_operands = 0 : i64, tpu.core_type = #tpu.core_type<tc>, window_params = [{transform_indices = @transform_0, window_bounds = array<i64: 128, 32>}, {pipeline_mode = #tpu.pipeline_mode<synchronous>, transform_indices = @transform_1, window_bounds = array<i64: 32, 128>}, {pipeline_mode = #tpu.pipeline_mode<synchronous>, transform_indices = @transform_2, window_bounds = array<i64: 1, 128>}, {pipeline_mode = #tpu.pipeline_mode<synchronous>, transform_indices = @transform_3, window_bounds = array<i64: 128, 128>}, {pipeline_mode = #tpu.pipeline_mode<synchronous>, transform_indices = @transform_4, window_bounds = array<i64: 1, 128>}, {pipeline_mode = #tpu.pipeline_mode<synchronous>, transform_indices = @transform_5, window_bounds = array<i64: 128, 128>}, {pipeline_mode = #tpu.pipeline_mode<synchronous>, transform_indices = @transform_6, window_bounds = array<i64: 1, 128>}, {transform_indices = @transform_7, window_bounds = array<i64: 128, 128>}]} {
    %c0 = arith.constant 0 : index
    %c0_0 = arith.constant 0 : index
    %0 = vector.load %arg1[%c0, %c0_0] : memref<128x32xf32, #tpu.memory_space<vmem>>, vector<128x32xf32>
    %c0_1 = arith.constant 0 : index
    %c0_2 = arith.constant 0 : index
    %1 = vector.load %arg2[%c0_1, %c0_2] : memref<32x128xbf16, #tpu.memory_space<vmem>>, vector<32x128xbf16>
    %2 = arith.truncf %0 : vector<128x32xf32> to vector<128x32xbf16>
    %cst = arith.constant dense<0.000000e+00> : vector<128x128xf32>
    %3 = tpu.matmul %2, %1, %cst {dimension_numbers = #tpu.dot_dimension_numbers<[1], [0], [0], [1], [0, 0, 1, 1], [], []>} : vector<128x32xbf16>, vector<32x128xbf16>, vector<128x128xf32> -> vector<128x128xf32>
    %c0_3 = arith.constant 0 : index
    %c0_4 = arith.constant 0 : index
    %4 = vector.load %arg3[%c0_3, %c0_4] : memref<1x128xf32, #tpu.memory_space<vmem>>, vector<1x128xf32>
    %5 = vector.broadcast %4 : vector<1x128xf32> to vector<128x128xf32>
    %6 = arith.addf %3, %5 : vector<128x128xf32>
    %cst_5 = arith.constant 0.000000e+00 : f32
    %7 = vector.broadcast %cst_5 : f32 to vector<128x128xf32>
    %8 = arith.maximumf %6, %7 : vector<128x128xf32>
    %c0_6 = arith.constant 0 : index
    %c0_7 = arith.constant 0 : index
    %9 = vector.load %arg4[%c0_6, %c0_7] : memref<128x128xbf16, #tpu.memory_space<vmem>>, vector<128x128xbf16>
    %10 = arith.truncf %8 : vector<128x128xf32> to vector<128x128xbf16>
    %cst_8 = arith.constant dense<0.000000e+00> : vector<128x128xf32>
    %11 = tpu.matmul %10, %9, %cst_8 {dimension_numbers = #tpu.dot_dimension_numbers<[1], [0], [0], [1], [0, 0, 1, 1], [], []>} : vector<128x128xbf16>, vector<128x128xbf16>, vector<128x128xf32> -> vector<128x128xf32>
    %c0_9 = arith.constant 0 : index
    %c0_10 = arith.constant 0 : index
    %12 = vector.load %arg5[%c0_9, %c0_10] : memref<1x128xf32, #tpu.memory_space<vmem>>, vector<1x128xf32>
    %13 = vector.broadcast %12 : vector<1x128xf32> to vector<128x128xf32>
    %14 = arith.addf %11, %13 : vector<128x128xf32>
    %c0_11 = arith.constant 0 : index
    %c0_12 = arith.constant 0 : index
    %15 = vector.load %arg6[%c0_11, %c0_12] : memref<128x128xbf16, #tpu.memory_space<vmem>>, vector<128x128xbf16>
    %16 = arith.truncf %14 : vector<128x128xf32> to vector<128x128xbf16>
    %cst_13 = arith.constant dense<0.000000e+00> : vector<128x128xf32>
    %17 = tpu.matmul %16, %15, %cst_13 {dimension_numbers = #tpu.dot_dimension_numbers<[1], [0], [0], [1], [0, 0, 1, 1], [], []>} : vector<128x128xbf16>, vector<128x128xbf16>, vector<128x128xf32> -> vector<128x128xf32>
    %c0_14 = arith.constant 0 : index
    %c0_15 = arith.constant 0 : index
    %18 = vector.load %arg7[%c0_14, %c0_15] : memref<1x128xf32, #tpu.memory_space<vmem>>, vector<1x128xf32>
    %19 = vector.broadcast %18 : vector<1x128xf32> to vector<128x128xf32>
    %20 = arith.addf %17, %19 : vector<128x128xf32>
    %21 = arith.negf %20 : vector<128x128xf32>
    %22 = math.exp %21 : vector<128x128xf32>
    %cst_16 = arith.constant 1.000000e+00 : f32
    %23 = vector.broadcast %cst_16 : f32 to vector<128x128xf32>
    %24 = arith.addf %23, %22 : vector<128x128xf32>
    %25 = arith.divf %23, %24 : vector<128x128xf32>
    %c0_17 = arith.constant 0 : index
    %c0_18 = arith.constant 0 : index
    %26 = vector.load %arg8[%c0_17, %c0_18] : memref<128x128xf32, #tpu.memory_space<vmem>>, vector<128x128xf32>
    tpu.vector_store %arg8[%c0_17, %c0_18], %25 {strides = array<i32>} : memref<128x128xf32, #tpu.memory_space<vmem>>, vector<128x128xf32>,
    return
  }
  func.func @transform_0(%arg0: i32) -> (i32, i32) {
    %c0_i32 = arith.constant 0 : i32
    %c0_i32_0 = arith.constant 0 : i32
    return %arg0, %c0_i32 : i32, i32
  }
  func.func @transform_1(%arg0: i32) -> (i32, i32) {
    %c0_i32 = arith.constant 0 : i32
    %c0_i32_0 = arith.constant 0 : i32
    %c0_i32_1 = arith.constant 0 : i32
    return %c0_i32, %c0_i32_0 : i32, i32
  }
  func.func @transform_2(%arg0: i32) -> (i32, i32) {
    %c0_i32 = arith.constant 0 : i32
    %c0_i32_0 = arith.constant 0 : i32
    %c0_i32_1 = arith.constant 0 : i32
    return %c0_i32, %c0_i32_0 : i32, i32
  }
  func.func @transform_3(%arg0: i32) -> (i32, i32) {
    %c0_i32 = arith.constant 0 : i32
    %c0_i32_0 = arith.constant 0 : i32
    %c0_i32_1 = arith.constant 0 : i32
    return %c0_i32, %c0_i32_0 : i32, i32
  }
  func.func @transform_4(%arg0: i32) -> (i32, i32) {
    %c0_i32 = arith.constant 0 : i32
    %c0_i32_0 = arith.constant 0 : i32
    %c0_i32_1 = arith.constant 0 : i32
    return %c0_i32, %c0_i32_0 : i32, i32
  }
  func.func @transform_5(%arg0: i32) -> (i32, i32) {
    %c0_i32 = arith.constant 0 : i32
    %c0_i32_0 = arith.constant 0 : i32
    %c0_i32_1 = arith.constant 0 : i32
    return %c0_i32, %c0_i32_0 : i32, i32
  }
  func.func @transform_6(%arg0: i32) -> (i32, i32) {
    %c0_i32 = arith.constant 0 : i32
    %c0_i32_0 = arith.constant 0 : i32
    %c0_i32_1 = arith.constant 0 : i32
    return %c0_i32, %c0_i32_0 : i32, i32
  }
  func.func @transform_7(%arg0: i32) -> (i32, i32) {
    %c0_i32 = arith.constant 0 : i32
    %c0_i32_0 = arith.constant 0 : i32
    return %arg0, %c0_i32 : i32, i32
  }
}

</mosaic_0001>

<bundles_post_ra>
// kernel: tpu_custom_call.1
= control target key start
LH: loop header
LB: loop body
LE: loop exit
PB: predicated region body
PF: predicated region fallthrough
CT: control target
= control target key end

     0   :  { %12 = vsyncpa [#allocation3], 0  ;;  %s1652_s0 = inlined_call_operand.vmem [shape: f32[256,32], index: 0, kind: input, shape index: {}]   ;;  %s1653_s1 = inlined_call_operand.vmem [shape: bf16[32,128], index: 1, kind: input, shape index: {}]   ;;  %s1654_s2 = inlined_call_operand.vmem [shape: f32[1,128], index: 2, kind: input, shape index: {}]   ;;  %s1655_s3 = inlined_call_operand.vmem [shape: bf16[128,128], index: 3, kind: input, shape index: {}]   ;;  %s1656_s4 = inlined_call_operand.vmem [shape: f32[1,128], index: 4, kind: input, shape index: {}]   ;;  %s1657_s5 = inlined_call_operand.vmem [shape: bf16[128,128], index: 5, kind: input, shape index: {}]   ;;  %s1658_s6 = inlined_call_operand.vmem [shape: f32[1,128], index: 6, kind: input, shape index: {}]   ;;  %s1659_s7 = inlined_call_operand.hbm [shape: f32[256,128], index: 7, kind: output, shape index: {}]  }
   0x1   :  { %14 = vsyncpa [#allocation3 + $0x1], 0  ;;  %s1420_s24 = smov 0   ;;  %s1422_s25 = smov 0  }
   0x2   :  { %s1424_s26 = smov 0   ;;  %s1426_s27 = smov 0  }
   0x3 LB: > { %s1441_s28 = sadd.s32 4294967295, %s1375_s27   ;;  %s1006_s29 = sadd.s32 4294967294, %s1375_s27   ;;  %s1375_s27 = sphi %s1426_s27, %s1665_s27   ;;  %s1371_s26 = sphi %s1424_s26, %s1664_s26   ;;  %s1367_s25 = sphi %s1422_s25, %s1663_s25   ;;  %s1363_s24 = sphi %s1420_s24, %s1662_s24  }
   0x4   : > { %s1445_s30 = sadd.s32 1, %s1375_s27   ;;  %s179_s8 = sadd.s32 1, %s1371_s26 }
   0x5   : > { %s176_s9 = ssub.s32 %s1375_s27, %s1445_s30  ;;  %p189_p0 = scmp.ne.s32.totalorder %s1371_s26, %s1367_s25 }
   0x6   : > { %p177_p1 = scmp.eq.s32.totalorder %s176_s9, 0  ;;  %p190_p2 = scmp.eq.s32.totalorder %s1441_s28, 1 }
   0x7   : > { %p195_p3 = scmp.ne.s32.totalorder %s1367_s25, %s1363_s24  ;;  %p196_p4 = scmp.eq.s32.totalorder %s1006_s29, 1 }
   0x8   : > { %s1456_s10 = scalar_select %p177_p1, %s1371_s26, %s179_s8  }
   0x9   : > { %p1458_p5 = por %p190_p2, %p189_p0  ;;  %p1462_p6 = por %p196_p4, %p195_p3 }
   0xa   : > { %p1009_p7 = scmp.ge.s32.totalorder %s1375_s27, 1  ;;  %p241_p8 = scmp.lt.s32.totalorder %s1375_s27, 3 }
   0xc   : > { %p242_p9 = pnand %p1009_p7, %p241_p8 }
   0xd   : > { %v1231_v0 = vld [vmem:[%s1653_s1] sm:$0xff] (!%p242_p9)   ;;  %s1011_s15 = sshll.u32 (!%p242_p9), %s1441_s28, 4  ;;  %v1232_v1 = vld [vmem:[%s1653_s1 + $0x8] sm:$0xff] (!%p242_p9)   ;;  %v1235_v4 = vld [vmem:[%s1655_s3 + $0x10] sm:$0xff] (!%p242_p9)   ;;  %vm328_vm0 = vcmask (!%p242_p9), 261120   ;;  %s270_s18 = sand.u32 (!%p242_p9), 1, %s1367_s25  }
   0xe   : > { %245 = sbr.rel (%p242_p9) target bundleno = 753 (0x2f1), region = 48  ;;  %p274_p10 = scmp.lt.s32.totalorder (!%p242_p9), %s1011_s15, 31  ;;  %1106 = vmatprep.subr.bf16.mxu0 (!%p242_p9), %v1231_v0  ;;  %v1233_v2 = vld [vmem:[%s1655_s3] sm:$0xff] (!%p242_p9)   ;;  %v1234_v3 = vld [vmem:[%s1655_s3 + $0x8] sm:$0xff] (!%p242_p9)   ;;  %v1236_v14 = vld [vmem:[%s1655_s3 + $0x18] sm:$0xff] (!%p242_p9)  }
   0xf   : > { %1107 = vmatpush3.bf16.msra.mxu0 (!%p242_p9), %v1231_v0  ;;  %1126 = vmatprep.subr.bf16.mxu1 (!%p242_p9), %v1233_v2  ;;  %v1237_v18 = vld [vmem:[%s1655_s3 + $0x20] sm:$0xff] (!%p242_p9)   ;;  %v1238_v22 = vld [vmem:[%s1655_s3 + $0x28] sm:$0xff] (!%p242_p9)   ;;  %v1239_v32 = vld [vmem:[%s1655_s3 + $0x30] sm:$0xff] (!%p242_p9)   ;;  %s1010_s19 = sshll.u32 (!%p242_p9), %s270_s18, 7  ;;  %s1063_s21 = sshll.u32 (!%p242_p9), %s1441_s28, 11 }
  0x10   : > { %1108 = vmatprep.subr.bf16.mxu0 (!%p242_p9), %v1232_v1  ;;  %1127 = vmatpush3.bf16.msra.mxu1 (!%p242_p9), %v1233_v2  ;;  %v1240_v33 = vld [vmem:[%s1655_s3 + $0x38] sm:$0xff] (!%p242_p9)   ;;  %v1241_v34 = vld [vmem:[%s1657_s5] sm:$0xff] (!%p242_p9)   ;;  %v1242_v35 = vld [vmem:[%s1657_s5 + $0x8] sm:$0xff] (!%p242_p9)   ;;  %s1582_s20 = scalar_lea.vmem (!%p242_p9), [#allocation2], %s1010_s19  ;;  %s1602_s9 = scalar_lea.hbm (!%p242_p9), %s1659_s7, %s1063_s21 }
  0x11   : > { %1128 = vmatprep.subr.bf16.mxu1 (!%p242_p9), %v1234_v3  ;;  %v1243_v36 = vld [vmem:[%s1657_s5 + $0x10] sm:$0xff] (!%p242_p9)   ;;  %v1244_v37 = vld [vmem:[%s1657_s5 + $0x18] sm:$0xff] (!%p242_p9)   ;;  %v1245_v38 = vld [vmem:[%s1657_s5 + $0x20] sm:$0xff] (!%p242_p9)   ;;  %s1611_s28 = scalar_lea.sflag (!%p242_p9), [#allocation3], %s270_s18  ;;  %s1377_s13 = smov (!%p242_p9), [#allocation2]  }
  0x12   : > { %v1246_v39 = vld [vmem:[%s1657_s5 + $0x28] sm:$0xff] (!%p242_p9)   ;;  %v1013_v40 = vld [vmem:[%s1654_s2] ss:$0 sm:$0xff] (!%p242_p9)  ;;  %s1317_s14 = sshll.u32 (!%p242_p9), %s1377_s13, 4  ;;  %s1318_s14 = int_to_ptr.vmem [resolvable:$false] %s1317_s14 }
  0x13   : > { %1109 = vmatpush3.bf16.msra.mxu0 (!%p242_p9), %v1232_v1 }
  0x14   : > { %1129 = vmatpush3.bf16.msra.mxu1 (!%p242_p9), %v1234_v3  ;;  %1158 = vmatprep.subr.bf16.mxu0 (!%p242_p9), %v1241_v34 }
  0x15   : > { %s1667_s15 = smov (!%p274_p10, %s1011_s15), 31  ;;  %1130 = vmatprep.subr.bf16.mxu1 %v1235_v4 }
  0x16   : > { %s1012_s22 = sshll.u32 %s1667_s15, 3  ;;  %s1319_s15 = scalar_lea.vmem %s1318_s14, 4096 }
  0x17   : > { %s1484_s8 = scalar_lea.vmem %s1652_s0, %s1012_s22  ;;  %s944_s22 = sshll.u32 %s1582_s20, 4  ;;  %s1604_s22 = int_to_ptr.vmem [resolvable:$true] %s944_s22 }
  0x18   : > { %v281_v5 = vld [vmem:[%s1484_s8] sm:$0xff]  ;;  %v282_v6 = vld [vmem:[%s1484_s8 + $0x8] sm:$0xff]  ;;  %v283_v7 = vld [vmem:[%s1484_s8 + $0x10] sm:$0xff]  ;;  %1131 = vmatpush3.bf16.msra.mxu1 %v1235_v4  ;;  %p1320_p0 = scmp.lt.s32.totalorder %s1604_s22, %s1318_s14 }
  0x19   : > { %v301_v8 = vpack.c.bf16 %v282_v6, %v281_v5  ;;  %v284_v9 = vld [vmem:[%s1484_s8 + $0x18] sm:$0xff]  ;;  %v285_v10 = vld [vmem:[%s1484_s8 + $0x20] sm:$0xff]  ;;  %v286_v11 = vld [vmem:[%s1484_s8 + $0x28] sm:$0xff]  ;;  %1132 = vmatprep.subr.bf16.mxu1 %v1236_v14 }
  0x1a   : > { %v302_v12 = vpack.c.bf16 %v284_v9, %v283_v7  ;;  %v303_v13 = vpack.c.bf16 %v286_v11, %v285_v10  ;;  %v287_v15 = vld [vmem:[%s1484_s8 + $0x30] sm:$0xff]  ;;  %v288_v16 = vld [vmem:[%s1484_s8 + $0x38] sm:$0xff]  ;;  %v289_v17 = vld [vmem:[%s1484_s8 + $0x40] sm:$0xff] }
  0x1b   : > { %1110 = vmatprep.mubr.msk.bf16.mxu0 %vm328_vm0, %v301_v8  ;;  %v290_v19 = vld [vmem:[%s1484_s8 + $0x48] sm:$0xff]  ;;  %v304_v20 = vpack.c.bf16 %v288_v16, %v287_v15  ;;  %v291_v23 = vld [vmem:[%s1484_s8 + $0x50] sm:$0xff]  ;;  %v292_v24 = vld [vmem:[%s1484_s8 + $0x58] sm:$0xff] }
  0x1c   : > { %1111 = vmatmul.mubr.msk.bf16.vlgmr.msra.gmra.mrb[0].mxu0 %vm328_vm0, %v302_v12  ;;  %v305_v21 = vpack.c.bf16 %v290_v19, %v289_v17  ;;  %1133 = vmatpush3.bf16.msra.mxu1 %v1236_v14  ;;  %v293_v25 = vld [vmem:[%s1484_s8 + $0x60] sm:$0xff]  ;;  %v294_v26 = vld [vmem:[%s1484_s8 + $0x68] sm:$0xff]  ;;  %v306_v27 = vpack.c.bf16 %v292_v24, %v291_v23  ;;  %v295_v29 = vld [vmem:[%s1484_s8 + $0x70] sm:$0xff] }
  0x1d   : > { %1114 = vmatprep.mubr.msk.bf16.mxu0 %vm328_vm0, %v303_v13  ;;  %1134 = vmatprep.subr.bf16.mxu1 %v1237_v18  ;;  %v307_v28 = vpack.c.bf16 %v294_v26, %v293_v25  ;;  %v296_v30 = vld [vmem:[%s1484_s8 + $0x78] sm:$0xff]  ;;  %s1313_s8 = scalar_lea.vmem %s1604_s22, 2048 }
  0x1e   : > { %v308_v31 = vpack.c.bf16 %v296_v30, %v295_v29  ;;  %1159 = vmatpush3.bf16.msra.mxu0 %v1241_v34  ;;  %v1248_v34 = vld [vmem:[%s1657_s5 + $0x38] sm:$0xff]   ;;  %p1314_p11 = scmp.ne.s32.totalorder %s1604_s22, %s1313_s8  ;;  %p1321_p1 = scmp.lt.s32.totalorder %s1319_s15, %s1313_s8 }
  0x1f   : > { %1160 = vmatprep.subr.bf16.mxu0 %v1242_v35 }
  0x20   : > { %1135 = vmatpush3.bf16.msra.mxu1 %v1237_v18  ;;  %p1315_p12 = pnand %p1314_p11, %p1458_p5  ;;  %p1322_p2 = por %p1321_p1, %p1320_p0 }
  0x21   : > { %1136 = vmatprep.subr.bf16.mxu1 %v1238_v22 }
  0x22   : > { %1161 = vmatpush3.bf16.msra.mxu0 %v1242_v35  ;;  %p1316_p13 = pneg %p1315_p12 }
  0x23   : > { %1162 = vmatprep.subr.bf16.mxu0 %v1243_v36 }
  0x24   : > { %1115 = vmatmul.mubr.msk.bf16.gmra.mrb[4].mxu0 %vm328_vm0, %v304_v20  ;;  %1137 = vmatpush3.bf16.msra.mxu1 %v1238_v22  ;;  %p1323_p3 = pnand %p1322_p2, %p1316_p13 }
  0x25   : > { %1118 = vmatprep.mubr.msk.bf16.mxu0 %vm328_vm0, %v305_v21  ;;  %1138 = vmatprep.subr.bf16.mxu1 %v1239_v32 }
  0x26   : > { %1163 = vmatpush3.bf16.msra.mxu0 %v1243_v36  ;;  %v1024_v36 = vld [vmem:[%s1656_s4] ss:$0 sm:$0xff] }
  0x27   : > { %1164 = vmatprep.subr.bf16.mxu0 %v1244_v37 }
  0x28   : > { %1139 = vmatpush3.bf16.msra.mxu1 %v1239_v32 }
  0x29   : > { %1140 = vmatprep.subr.bf16.mxu1 %v1240_v33 }
  0x2a   : > { %1165 = vmatpush3.bf16.msra.mxu0 %v1244_v37 }
  0x2b   : > { %1166 = vmatprep.subr.bf16.mxu0 %v1245_v38 }
  0x2c   : > { %1119 = vmatmul.mubr.msk.bf16.gmra.mrb[8].mxu0 %vm328_vm0, %v306_v27  ;;  %1141 = vmatpush3.bf16.msra.mxu1 %v1240_v33  ;;  %v1247_v33 = vld [vmem:[%s1657_s5 + $0x30] sm:$0xff]  }
  0x2d   : > { %1122 = vmatprep.mubr.msk.bf16.mxu0 %vm328_vm0, %v307_v28 }
  0x2e   : > { %1167 = vmatpush3.bf16.msra.mxu0 %v1245_v38 }
  0x2f   : > { %1168 = vmatprep.subr.bf16.mxu0 %v1246_v39 }
  0x32   : > { %1169 = vmatpush3.bf16.msra.mxu0 %v1246_v39 }
  0x33   : > { %1170 = vmatprep.subr.bf16.mxu0 %v1247_v33 }
  0x34   : > { %1123 = vmatmul.mubr.msk.bf16.gmra.mrb[12].mxu0 %vm328_vm0, %v308_v31 }
  0x36   : > { %1171 = vmatpush3.bf16.msra.mxu0 %v1247_v33 }
  0x37   : > { %1172 = vmatprep.subr.bf16.mxu0 %v1248_v34 }
  0x3a   : > { %1173 = vmatpush3.bf16.msra.mxu0 %v1248_v34 }
  0xef   : > { %v1112_v41 = vpop.f32.mrb[0].mxu0 }
  0xf0   : > { %v396_v42 = vadd.f32 %v1112_v41, %v1013_v40  ;;  %v387_v43 = vpop.f32.mrb[1].mxu0 }
  0xf1   : > { %v388_v44 = vadd.f32 %v1013_v40, %v387_v43  ;;  %v1113_v45 = vpop.f32.mrb[2].mxu0 }
  0xf2   : > { %v399_v46 = vadd.f32 %v1113_v45, %v1013_v40  ;;  %v390_v47 = vpop.f32.mrb[3].mxu0  ;;  %v452_v49 = vmax.f32 %v396_v42, 0.0 }
  0xf3   : > { %v391_v48 = vadd.f32 %v1013_v40, %v390_v47  ;;  %v450_v51 = vmax.f32 %v388_v44, 0.0 }
  0xf4   : > { %v453_v50 = vmax.f32 %v399_v46, 0.0 }
  0xf5   : > { %v451_v52 = vmax.f32 %v391_v48, 0.0 }
  0xf6   : > { %v483_v53 = vpack.c.bf16 %v453_v50, %v452_v49 }
  0xf7   : > { %v1116_v54 = vpop.f32.mrb[4].mxu0  ;;  %v482_v55 = vpack.c.bf16 %v451_v52, %v450_v51 }
  0xf8   : > { %v412_v56 = vadd.f32 %v1116_v54, %v1013_v40  ;;  %v403_v57 = vpop.f32.mrb[5].mxu0 }
  0xf9   : > { %v404_v58 = vadd.f32 %v1013_v40, %v403_v57  ;;  %v1117_v59 = vpop.f32.mrb[6].mxu0  ;;  %1142 = vmatprep.mubr.bf16.mxu1 %v482_v55 }
  0xfa   : > { %v415_v60 = vadd.f32 %v1117_v59, %v1013_v40  ;;  %v406_v61 = vpop.f32.mrb[7].mxu0  ;;  %1143 = vmatmul.mubr.bf16.vlgmr.msra.gmra.mrb[0].mxu1 %v483_v53  ;;  %v456_v63 = vmax.f32 %v412_v56, 0.0 }
  0xfb   : > { %v407_v62 = vadd.f32 %v1013_v40, %v406_v61  ;;  %v454_v1 = vmax.f32 %v404_v58, 0.0 }
  0xfc   : > { %v457_v0 = vmax.f32 %v415_v60, 0.0 }
  0xfd   : > { %v455_v2 = vmax.f32 %v407_v62, 0.0 }
  0xfe   : > { %v485_v3 = vpack.c.bf16 %v457_v0, %v456_v63 }
  0xff   : > { %v484_v4 = vpack.c.bf16 %v455_v2, %v454_v1  ;;  %v1120_v5 = vpop.f32.mrb[8].mxu0 }
 0x100   : > { %v428_v6 = vadd.f32 %v1120_v5, %v1013_v40  ;;  %v419_v7 = vpop.f32.mrb[9].mxu0 }
 0x101   : > { %v420_v8 = vadd.f32 %v1013_v40, %v419_v7  ;;  %v1121_v9 = vpop.f32.mrb[10].mxu0  ;;  %1146 = vmatprep.mubr.bf16.mxu1 %v484_v4 }
 0x102   : > { %v431_v10 = vadd.f32 %v1121_v9, %v1013_v40  ;;  %v422_v11 = vpop.f32.mrb[11].mxu0  ;;  %1147 = vmatmul.mubr.bf16.gmra.mrb[4].mxu1 %v485_v3  ;;  %v460_v13 = vmax.f32 %v428_v6, 0.0 }
 0x103   : > { %v423_v12 = vadd.f32 %v1013_v40, %v422_v11  ;;  %v458_v15 = vmax.f32 %v420_v8, 0.0 }
 0x104   : > { %v461_v14 = vmax.f32 %v431_v10, 0.0 }
 0x105   : > { %v459_v16 = vmax.f32 %v423_v12, 0.0  ;;  %v1561_v12 = vld [vmem:[%s1658_s6] ss:$0 sm:$0xff] }
 0x106   : > { %v487_v17 = vpack.c.bf16 %v461_v14, %v460_v13 }
 0x107   : > { %v486_v18 = vpack.c.bf16 %v459_v16, %v458_v15  ;;  %v1124_v19 = vpop.f32.mrb[12].mxu0 }
 0x108   : > { %v444_v20 = vadd.f32 %v1124_v19, %v1013_v40  ;;  %v435_v21 = vpop.f32.mrb[13].mxu0 }
 0x109   : > { %v436_v22 = vadd.f32 %v1013_v40, %v435_v21  ;;  %v1125_v23 = vpop.f32.mrb[14].mxu0  ;;  %1150 = vmatprep.mubr.bf16.mxu1 %v486_v18 }
 0x10a   : > { %v447_v24 = vadd.f32 %v1125_v23, %v1013_v40  ;;  %v438_v25 = vpop.f32.mrb[15].mxu0  ;;  %1151 = vmatmul.mubr.bf16.gmra.mrb[8].mxu1 %v487_v17  ;;  %v464_v27 = vmax.f32 %v444_v20, 0.0 }
 0x10b   : > { %v439_v26 = vadd.f32 %v1013_v40, %v438_v25  ;;  %v462_v29 = vmax.f32 %v436_v22, 0.0 }
 0x10c   : > { %v465_v28 = vmax.f32 %v447_v24, 0.0 }
 0x10d   : > { %v463_v30 = vmax.f32 %v439_v26, 0.0 }
 0x10e   : > { %v489_v31 = vpack.c.bf16 %v465_v28, %v464_v27 }
 0x10f   : > { %v488_v32 = vpack.c.bf16 %v463_v30, %v462_v29 }
 0x111   : > { %1154 = vmatprep.mubr.bf16.mxu1 %v488_v32 }
 0x112   : > { %1155 = vmatmul.mubr.bf16.gmra.mrb[12].mxu1 %v489_v31 }
 0x1cd   : > { %v1144_v35 = vpop.f32.mrb[0].mxu1 }
 0x1ce   : > { %v579_v37 = vpop.f32.mrb[1].mxu1  ;;  %v588_v39 = vadd.f32 %v1144_v35, %v1024_v36 }
 0x1cf   : > { %v1145_v38 = vpop.f32.mrb[2].mxu1  ;;  %v580_v42 = vadd.f32 %v1024_v36, %v579_v37 }
 0x1d0   : > { %v591_v40 = vadd.f32 %v1145_v38, %v1024_v36  ;;  %v582_v41 = vpop.f32.mrb[3].mxu1 }
 0x1d1   : > { %v583_v43 = vadd.f32 %v1024_v36, %v582_v41 }
 0x1d2   : > { %v659_v44 = vpack.c.bf16 %v591_v40, %v588_v39 }
 0x1d3   : > { %v658_v45 = vpack.c.bf16 %v583_v43, %v580_v42 }
 0x1d5   : > { %v1148_v46 = vpop.f32.mrb[4].mxu1  ;;  %1174 = vmatprep.mubr.bf16.mxu0 %v658_v45 }
 0x1d6   : > { %v595_v47 = vpop.f32.mrb[5].mxu1  ;;  %1175 = vmatmul.mubr.bf16.vlgmr.msra.gmra.mrb[16].mxu0 %v659_v44  ;;  %v604_v49 = vadd.f32 %v1148_v46, %v1024_v36 }
 0x1d7   : > { %v1149_v48 = vpop.f32.mrb[6].mxu1  ;;  %v596_v52 = vadd.f32 %v1024_v36, %v595_v47 }
 0x1d8   : > { %v607_v50 = vadd.f32 %v1149_v48, %v1024_v36  ;;  %v598_v51 = vpop.f32.mrb[7].mxu1 }
 0x1d9   : > { %v599_v53 = vadd.f32 %v1024_v36, %v598_v51 }
 0x1da   : > { %v661_v54 = vpack.c.bf16 %v607_v50, %v604_v49 }
 0x1db   : > { %v660_v55 = vpack.c.bf16 %v599_v53, %v596_v52 }
 0x1dd   : > { %v1152_v56 = vpop.f32.mrb[8].mxu1  ;;  %1178 = vmatprep.mubr.bf16.mxu0 %v660_v55 }
 0x1de   : > { %v611_v57 = vpop.f32.mrb[9].mxu1  ;;  %1179 = vmatmul.mubr.bf16.gmra.mrb[20].mxu0 %v661_v54  ;;  %v620_v59 = vadd.f32 %v1152_v56, %v1024_v36 }
 0x1df   : > { %v1153_v58 = vpop.f32.mrb[10].mxu1  ;;  %v612_v62 = vadd.f32 %v1024_v36, %v611_v57 }
 0x1e0   : > { %v623_v60 = vadd.f32 %v1153_v58, %v1024_v36  ;;  %v614_v61 = vpop.f32.mrb[11].mxu1 }
 0x1e1   : > { %v615_v63 = vadd.f32 %v1024_v36, %v614_v61 }
 0x1e2   : > { %v663_v0 = vpack.c.bf16 %v623_v60, %v620_v59 }
 0x1e3   : > { %v662_v1 = vpack.c.bf16 %v615_v63, %v612_v62 }
 0x1e5   : > { %v1156_v2 = vpop.f32.mrb[12].mxu1  ;;  %1182 = vmatprep.mubr.bf16.mxu0 %v662_v1 }
 0x1e6   : > { %v627_v3 = vpop.f32.mrb[13].mxu1  ;;  %1183 = vmatmul.mubr.bf16.gmra.mrb[24].mxu0 %v663_v0  ;;  %v636_v5 = vadd.f32 %v1156_v2, %v1024_v36 }
 0x1e7   : > { %v1157_v4 = vpop.f32.mrb[14].mxu1  ;;  %v628_v8 = vadd.f32 %v1024_v36, %v627_v3 }
 0x1e8   : > { %v639_v6 = vadd.f32 %v1157_v4, %v1024_v36  ;;  %v630_v7 = vpop.f32.mrb[15].mxu1 }
 0x1e9   : > { %v631_v9 = vadd.f32 %v1024_v36, %v630_v7 }
 0x1ea   : > { %v665_v10 = vpack.c.bf16 %v639_v6, %v636_v5 }
 0x1eb   : > { %v664_v11 = vpack.c.bf16 %v631_v9, %v628_v8 }
 0x1ed   : > { %1186 = vmatprep.mubr.bf16.mxu0 %v664_v11 }
 0x1ee   : > { %1187 = vmatmul.mubr.bf16.gmra.mrb[28].mxu0 %v665_v10 }
 0x2a9   : > { %v1176_v13 = vpop.f32.mrb[16].mxu0 }
 0x2aa   : > { %v764_v14 = vadd.f32 %v1176_v13, %v1561_v12  ;;  %v755_v15 = vpop.f32.mrb[17].mxu0 }
 0x2ab   : > { %v756_v16 = vadd.f32 %v1561_v12, %v755_v15  ;;  %v1177_v17 = vpop.f32.mrb[18].mxu0 }
 0x2ac   : > { %v1044_v18 = vmul.f32 -1.442695, %v764_v14  ;;  %v767_v19 = vadd.f32 %v1177_v17, %v1561_v12  ;;  %v758_v20 = vpop.f32.mrb[19].mxu0 }
 0x2ad   : > { %v1042_v21 = vmul.f32 -1.442695, %v756_v16  ;;  %v759_v22 = vadd.f32 %v1561_v12, %v758_v20 }
 0x2ae   : > { %1249 = vpow2.f32 %v1044_v18  ;;  %v1045_v23 = vmul.f32 -1.442695, %v767_v19 }
 0x2af   : > { %1251 = vpow2.f32 %v1042_v21  ;;  %v1043_v24 = vmul.f32 -1.442695, %v759_v22 }
 0x2b0   : > { %1253 = vpow2.f32 %v1045_v23 }
 0x2b1   : > { %1255 = vpow2.f32 %v1043_v24  ;;  %v1180_v25 = vpop.f32.mrb[20].mxu0 }
 0x2b2   : > { %v780_v26 = vadd.f32 %v1180_v25, %v1561_v12  ;;  %v771_v27 = vpop.f32.mrb[21].mxu0 }
 0x2b3   : > { %v772_v28 = vadd.f32 %v1561_v12, %v771_v27  ;;  %v1181_v29 = vpop.f32.mrb[22].mxu0 }
 0x2b4   : > { %v1048_v30 = vmul.f32 -1.442695, %v780_v26  ;;  %v783_v31 = vadd.f32 %v1181_v29, %v1561_v12  ;;  %v774_v32 = vpop.f32.mrb[23].mxu0 }
 0x2b5   : > { %v1046_v33 = vmul.f32 -1.442695, %v772_v28  ;;  %v775_v34 = vadd.f32 %v1561_v12, %v774_v32 }
 0x2b6   : > { %1257 = vpow2.f32 %v1048_v30  ;;  %v1049_v35 = vmul.f32 -1.442695, %v783_v31 }
 0x2b7   : > { %1259 = vpow2.f32 %v1046_v33  ;;  %v1047_v36 = vmul.f32 -1.442695, %v775_v34 }
 0x2b8   : > { %v1250_v37 = vpop.eup %1249  ;;  %1261 = vpow2.f32 %v1049_v35 }
 0x2b9   : > { %v1252_v38 = vpop.eup %1251  ;;  %v868_v39 = vadd.f32 1.0, %v1250_v37  ;;  %1263 = vpow2.f32 %v1047_v36  ;;  %v1184_v40 = vpop.f32.mrb[24].mxu0 }
 0x2ba   : > { %v1254_v41 = vpop.eup %1253  ;;  %v866_v42 = vadd.f32 1.0, %v1252_v38  ;;  %v796_v43 = vadd.f32 %v1184_v40, %v1561_v12  ;;  %v787_v44 = vpop.f32.mrb[25].mxu0 }
 0x2bb   : > { %v1256_v45 = vpop.eup %1255  ;;  %1265 = vrcp.f32 %v868_v39  ;;  %v869_v46 = vadd.f32 1.0, %v1254_v41  ;;  %v788_v47 = vadd.f32 %v1561_v12, %v787_v44  ;;  %v1185_v48 = vpop.f32.mrb[26].mxu0 }
 0x2bc   : > { %1267 = vrcp.f32 %v866_v42  ;;  %v867_v49 = vadd.f32 1.0, %v1256_v45  ;;  %v1052_v50 = vmul.f32 -1.442695, %v796_v43  ;;  %v799_v51 = vadd.f32 %v1185_v48, %v1561_v12  ;;  %v790_v52 = vpop.f32.mrb[27].mxu0 }
 0x2bd   : > { %1269 = vrcp.f32 %v869_v46  ;;  %v1050_v53 = vmul.f32 -1.442695, %v788_v47  ;;  %v791_v54 = vadd.f32 %v1561_v12, %v790_v52 }
 0x2be   : > { %1271 = vrcp.f32 %v867_v49  ;;  %v1053_v55 = vmul.f32 -1.442695, %v799_v51 }
 0x2bf   : > { %1273 = vpow2.f32 %v1052_v50  ;;  %v1051_v56 = vmul.f32 -1.442695, %v791_v54 }
 0x2c0   : > { %v1258_v57 = vpop.eup %1257  ;;  %1275 = vpow2.f32 %v1050_v53 }
 0x2c1   : > { %v1260_v58 = vpop.eup %1259  ;;  %v872_v59 = vadd.f32 1.0, %v1258_v57  ;;  %1277 = vpow2.f32 %v1053_v55  ;;  %v1188_v60 = vpop.f32.mrb[28].mxu0 }
 0x2c2   : > { %v1262_v61 = vpop.eup %1261  ;;  %v870_v62 = vadd.f32 1.0, %v1260_v58  ;;  %1279 = vpow2.f32 %v1051_v56  ;;  %v812_v63 = vadd.f32 %v1188_v60, %v1561_v12  ;;  %v803_v0 = vpop.f32.mrb[29].mxu0 }
 0x2c3   : > { %v1264_v1 = vpop.eup %1263  ;;  %1281 = vrcp.f32 %v872_v59  ;;  %v873_v2 = vadd.f32 1.0, %v1262_v61  ;;  %v804_v3 = vadd.f32 %v1561_v12, %v803_v0  ;;  %v1189_v4 = vpop.f32.mrb[30].mxu0 }
 0x2c4   : > { %1283 = vrcp.f32 %v870_v62  ;;  %v871_v5 = vadd.f32 1.0, %v1264_v1  ;;  %v1056_v6 = vmul.f32 -1.442695, %v812_v63  ;;  %v815_v7 = vadd.f32 %v1189_v4, %v1561_v12  ;;  %v806_v8 = vpop.f32.mrb[31].mxu0 }
 0x2c5   : > { %v1266_v9 = vpop.eup %1265  ;;  %1285 = vrcp.f32 %v873_v2  ;;  %v1054_v10 = vmul.f32 -1.442695, %v804_v3  ;;  %v807_v11 = vadd.f32 %v1561_v12, %v806_v8 }
 0x2c6   : > { %v1268_v13 = vpop.eup %1267  ;;  %916 = vst [vmem:[%s1582_s20 + $0x10] sm:$0xff] %v1266_v9  ;;  %1287 = vrcp.f32 %v871_v5  ;;  %v1057_v14 = vmul.f32 -1.442695, %v815_v7 }
 0x2c7   : > { %v1270_v15 = vpop.eup %1269  ;;  %914 = vst [vmem:[%s1582_s20] sm:$0xff] %v1268_v13  ;;  %1289 = vpow2.f32 %v1056_v6  ;;  %v1055_v16 = vmul.f32 -1.442695, %v807_v11 }
 0x2c8   : > { %v1272_v17 = vpop.eup %1271  ;;  %917 = vst [vmem:[%s1582_s20 + $0x18] sm:$0xff] %v1270_v15  ;;  %1291 = vpow2.f32 %v1054_v10 }
 0x2c9   : > { %v1274_v18 = vpop.eup %1273  ;;  %915 = vst [vmem:[%s1582_s20 + $0x8] sm:$0xff] %v1272_v17  ;;  %1293 = vpow2.f32 %v1057_v14 }
 0x2ca   : > { %v1276_v12 = vpop.eup %1275  ;;  %v876_v19 = vadd.f32 1.0, %v1274_v18  ;;  %1295 = vpow2.f32 %v1055_v16 }
 0x2cb   : > { %v1278_v20 = vpop.eup %1277  ;;  %v874_v21 = vadd.f32 1.0, %v1276_v12 }
 0x2cc   : > { %v1280_v22 = vpop.eup %1279  ;;  %1297 = vrcp.f32 %v876_v19  ;;  %v877_v23 = vadd.f32 1.0, %v1278_v20 }
 0x2cd   : > { %v1282_v24 = vpop.eup %1281  ;;  %1299 = vrcp.f32 %v874_v21  ;;  %v875_v25 = vadd.f32 1.0, %v1280_v22 }
 0x2ce   : > { %v1284_v26 = vpop.eup %1283  ;;  %920 = vst [vmem:[%s1582_s20 + $0x30] sm:$0xff] %v1282_v24  ;;  %1301 = vrcp.f32 %v877_v23 }
 0x2cf   : > { %v1286_v27 = vpop.eup %1285  ;;  %918 = vst [vmem:[%s1582_s20 + $0x20] sm:$0xff] %v1284_v26  ;;  %1303 = vrcp.f32 %v875_v25 }
 0x2d0   : > { %v1288_v28 = vpop.eup %1287  ;;  %921 = vst [vmem:[%s1582_s20 + $0x38] sm:$0xff] %v1286_v27 }
 0x2d1   : > { %v1290_v29 = vpop.eup %1289  ;;  %919 = vst [vmem:[%s1582_s20 + $0x28] sm:$0xff] %v1288_v28 }
 0x2d2   : > { %v1292_v30 = vpop.eup %1291  ;;  %v880_v31 = vadd.f32 1.0, %v1290_v29 }
 0x2d3   : > { %v1294_v32 = vpop.eup %1293  ;;  %v878_v33 = vadd.f32 1.0, %v1292_v30 }
 0x2d4   : > { %v1296_v34 = vpop.eup %1295  ;;  %1305 = vrcp.f32 %v880_v31  ;;  %v881_v35 = vadd.f32 1.0, %v1294_v32 }
 0x2d5   : > { %1307 = vrcp.f32 %v878_v33  ;;  %v879_v36 = vadd.f32 1.0, %v1296_v34 }
 0x2d6   : > { %v1298_v37 = vpop.eup %1297  ;;  %1309 = vrcp.f32 %v881_v35 }
 0x2d7   : > { %v1300_v38 = vpop.eup %1299  ;;  %924 = vst [vmem:[%s1582_s20 + $0x50] sm:$0xff] %v1298_v37  ;;  %1311 = vrcp.f32 %v879_v36 }
 0x2d8   : > { %v1302_v39 = vpop.eup %1301  ;;  %922 = vst [vmem:[%s1582_s20 + $0x40] sm:$0xff] %v1300_v38 }
 0x2d9   : > { %v1304_v40 = vpop.eup %1303  ;;  %925 = vst [vmem:[%s1582_s20 + $0x58] sm:$0xff] %v1302_v39 }
 0x2da   : > { %923 = vst [vmem:[%s1582_s20 + $0x48] sm:$0xff] %v1304_v40 }
 0x2de   : > { %v1306_v41 = vpop.eup %1305 }
 0x2df   : > { %v1308_v42 = vpop.eup %1307  ;;  %928 = vst [vmem:[%s1582_s20 + $0x70] sm:$0xff] %v1306_v41 }
 0x2e0   : > { %v1310_v43 = vpop.eup %1309  ;;  %926 = vst [vmem:[%s1582_s20 + $0x60] sm:$0xff] %v1308_v42 }
 0x2e1   : > { %v1312_v44 = vpop.eup %1311  ;;  %929 = vst [vmem:[%s1582_s20 + $0x78] sm:$0xff] %v1310_v43 }
 0x2e2   : > { %927 = vst [vmem:[%s1582_s20 + $0x68] sm:$0xff] %v1312_v44 }
 0x2e3   : > { %1326 = shalt.err (!%p1323_p3)
}
 0x2e4   : > { %s1327_s16 = scalar_lea.hbm %s1602_s9, 2048  ;;  %s1331_s19 = scalar_lea.hbm %s1659_s7, 4096 }
 0x2e5   : > { %p1328_p4 = scmp.ne.s32.totalorder %s1602_s9, %s1327_s16  ;;  %p1332_p9 = scmp.lt.u32.totalorder %s1602_s9, %s1659_s7 }
 0x2e6   : > { %p1333_p10 = scmp.lt.u32.totalorder %s1331_s19, %s1327_s16  ;;  %p1335_p12 = scmp.lt.u32.totalorder %s1327_s16, %s1602_s9 }
 0x2e7   : > { %p1329_p7 = pnand %p1328_p4, %p1458_p5 }
 0x2e8   : > { %p1334_p11 = por %p1333_p10, %p1332_p9 }
 0x2e9   : > { %p1330_p8 = pneg %p1329_p7 }
 0x2ea   : > { %p1336_p13 = por %p1335_p12, %p1334_p11 }
 0x2ec   : > { %p1337_p0 = pnand %p1336_p13, %p1330_p8 }
 0x2ee   : > { %1340 = shalt.err (!%p1337_p0)
}
 0x2ef   : > { %s1378_s23 = smov 128   ;;  %s1379_s29 = smov 8  }
 0x2f0   : > { %1190 = dma.vmem_to_hbm [thread:$0]  (%p1458_p5), %s1604_s22, 2048, %s1602_s9, %s1611_s28, %s1378_s23, %s1378_s23, %s1379_s29  }
 0x2f1 PF: > { %p1196_p1 = scmp.ge.s32.totalorder %s1375_s27, 2  ;;  %s959_s8 = sand.u32 1, %s1363_s24  }
 0x2f2   : > { %s960_s13 = scalar_lea.sflag [#allocation3], %s959_s8 }
 0x2f3   : > { %p1193_p2 = pnand %p1196_p1, %p1462_p6 }
 0x2f5   : > { %1358 = dma.done.wait (!%p1193_p2), %s960_s13, 2048  }
 0x2f6   : > { %1360 = vsyncadd (!%p1193_p2), %s960_s13, 4294965248  ;;  %p17_p3 = scmp.ge.s32.totalorder %s1445_s30, 4   ;;  %s1662_s24 = smov %s1367_s25 }
 0x2f7   : > { %s1663_s25 = smov %s1371_s26  ;;  %s1664_s26 = smov %s1456_s10 }
 0x2f8   : > { %s1665_s27 = smov %s1445_s30  ;;  %19 = sbr.rel (!%p17_p3) target bundleno = 3 (0x3), region = 83 }
 0x2ff   :  { %965 = vsyncpa [#allocation3], 1 }
 0x300   :  { %967 = vsyncpa [#allocation3 + $0x1], 1 }

// kernel: tpu_custom_call.1
= control target key start
LH: loop header
LB: loop body
LE: loop exit
PB: predicated region body
PF: predicated region fallthrough
CT: control target
= control target key end

     0   :  { %12 = vsyncpa [#allocation3], 0  ;;  %s1652_s0 = inlined_call_operand.vmem [shape: f32[256,32], index: 0, kind: input, shape index: {}]   ;;  %s1653_s1 = inlined_call_operand.vmem [shape: bf16[32,128], index: 1, kind: input, shape index: {}]   ;;  %s1654_s2 = inlined_call_operand.vmem [shape: f32[1,128], index: 2, kind: input, shape index: {}]   ;;  %s1655_s3 = inlined_call_operand.vmem [shape: bf16[128,128], index: 3, kind: input, shape index: {}]   ;;  %s1656_s4 = inlined_call_operand.vmem [shape: f32[1,128], index: 4, kind: input, shape index: {}]   ;;  %s1657_s5 = inlined_call_operand.vmem [shape: bf16[128,128], index: 5, kind: input, shape index: {}]   ;;  %s1658_s6 = inlined_call_operand.vmem [shape: f32[1,128], index: 6, kind: input, shape index: {}]   ;;  %s1659_s7 = inlined_call_operand.hbm [shape: f32[256,128], index: 7, kind: output, shape index: {}]  }
   0x1   :  { %14 = vsyncpa [#allocation3 + $0x1], 0  ;;  %s1420_s24 = smov 0   ;;  %s1422_s25 = smov 0  }
   0x2   :  { %s1424_s26 = smov 0   ;;  %s1426_s27 = smov 0  }
   0x3 LB: > { %s1441_s28 = sadd.s32 4294967295, %s1375_s27   ;;  %s1006_s29 = sadd.s32 4294967294, %s1375_s27   ;;  %s1375_s27 = sphi %s1426_s27, %s1665_s27   ;;  %s1371_s26 = sphi %s1424_s26, %s1664_s26   ;;  %s1367_s25 = sphi %s1422_s25, %s1663_s25   ;;  %s1363_s24 = sphi %s1420_s24, %s1662_s24  }
   0x4   : > { %s1445_s30 = sadd.s32 1, %s1375_s27   ;;  %s179_s8 = sadd.s32 1, %s1371_s26 }
   0x5   : > { %s176_s9 = ssub.s32 %s1375_s27, %s1445_s30  ;;  %p189_p0 = scmp.ne.s32.totalorder %s1371_s26, %s1367_s25 }
   0x6   : > { %p177_p1 = scmp.eq.s32.totalorder %s176_s9, 0  ;;  %p190_p2 = scmp.eq.s32.totalorder %s1441_s28, 1 }
   0x7   : > { %p195_p3 = scmp.ne.s32.totalorder %s1367_s25, %s1363_s24  ;;  %p196_p4 = scmp.eq.s32.totalorder %s1006_s29, 1 }
   0x8   : > { %s1456_s10 = scalar_select %p177_p1, %s1371_s26, %s179_s8  }
   0x9   : > { %p1458_p5 = por %p190_p2, %p189_p0  ;;  %p1462_p6 = por %p196_p4, %p195_p3 }
   0xa   : > { %p1009_p7 = scmp.ge.s32.totalorder %s1375_s27, 1  ;;  %p241_p8 = scmp.lt.s32.totalorder %s1375_s27, 3 }
   0xc   : > { %p242_p9 = pnand %p1009_p7, %p241_p8 }
   0xd   : > { %v1231_v0 = vld [vmem:[%s1653_s1] sm:$0xff] (!%p242_p9)   ;;  %s1011_s15 = sshll.u32 (!%p242_p9), %s1441_s28, 4  ;;  %v1232_v1 = vld [vmem:[%s1653_s1 + $0x8] sm:$0xff] (!%p242_p9)   ;;  %v1235_v4 = vld [vmem:[%s1655_s3 + $0x10] sm:$0xff] (!%p242_p9)   ;;  %vm328_vm0 = vcmask (!%p242_p9), 261120   ;;  %s270_s18 = sand.u32 (!%p242_p9), 1, %s1367_s25  }
   0xe   : > { %245 = sbr.rel (%p242_p9) target bundleno = 753 (0x2f1), region = 48  ;;  %p274_p10 = scmp.lt.s32.totalorder (!%p242_p9), %s1011_s15, 31  ;;  %1106 = vmatprep.subr.bf16.mxu0 (!%p242_p9), %v1231_v0  ;;  %v1233_v2 = vld [vmem:[%s1655_s3] sm:$0xff] (!%p242_p9)   ;;  %v1234_v3 = vld [vmem:[%s1655_s3 + $0x8] sm:$0xff] (!%p242_p9)   ;;  %v1236_v14 = vld [vmem:[%s1655_s3 + $0x18] sm:$0xff] (!%p242_p9)  }
   0xf   : > { %1107 = vmatpush3.bf16.msra.mxu0 (!%p242_p9), %v1231_v0  ;;  %1126 = vmatprep.subr.bf16.mxu1 (!%p242_p9), %v1233_v2  ;;  %v1237_v18 = vld [vmem:[%s1655_s3 + $0x20] sm:$0xff] (!%p242_p9)   ;;  %v1238_v22 = vld [vmem:[%s1655_s3 + $0x28] sm:$0xff] (!%p242_p9)   ;;  %v1239_v32 = vld [vmem:[%s1655_s3 + $0x30] sm:$0xff] (!%p242_p9)   ;;  %s1010_s19 = sshll.u32 (!%p242_p9), %s270_s18, 7  ;;  %s1063_s21 = sshll.u32 (!%p242_p9), %s1441_s28, 11 }
  0x10   : > { %1108 = vmatprep.subr.bf16.mxu0 (!%p242_p9), %v1232_v1  ;;  %1127 = vmatpush3.bf16.msra.mxu1 (!%p242_p9), %v1233_v2  ;;  %v1240_v33 = vld [vmem:[%s1655_s3 + $0x38] sm:$0xff] (!%p242_p9)   ;;  %v1241_v34 = vld [vmem:[%s1657_s5] sm:$0xff] (!%p242_p9)   ;;  %v1242_v35 = vld [vmem:[%s1657_s5 + $0x8] sm:$0xff] (!%p242_p9)   ;;  %s1582_s20 = scalar_lea.vmem (!%p242_p9), [#allocation2], %s1010_s19  ;;  %s1602_s9 = scalar_lea.hbm (!%p242_p9), %s1659_s7, %s1063_s21 }
  0x11   : > { %1128 = vmatprep.subr.bf16.mxu1 (!%p242_p9), %v1234_v3  ;;  %v1243_v36 = vld [vmem:[%s1657_s5 + $0x10] sm:$0xff] (!%p242_p9)   ;;  %v1244_v37 = vld [vmem:[%s1657_s5 + $0x18] sm:$0xff] (!%p242_p9)   ;;  %v1245_v38 = vld [vmem:[%s1657_s5 + $0x20] sm:$0xff] (!%p242_p9)   ;;  %s1611_s28 = scalar_lea.sflag (!%p242_p9), [#allocation3], %s270_s18  ;;  %s1377_s13 = smov (!%p242_p9), [#allocation2]  }
  0x12   : > { %v1246_v39 = vld [vmem:[%s1657_s5 + $0x28] sm:$0xff] (!%p242_p9)   ;;  %v1013_v40 = vld [vmem:[%s1654_s2] ss:$0 sm:$0xff] (!%p242_p9)  ;;  %s1317_s14 = sshll.u32 (!%p242_p9), %s1377_s13, 4  ;;  %s1318_s14 = int_to_ptr.vmem [resolvable:$false] %s1317_s14 }
  0x13   : > { %1109 = vmatpush3.bf16.msra.mxu0 (!%p242_p9), %v1232_v1 }
  0x14   : > { %1129 = vmatpush3.bf16.msra.mxu1 (!%p242_p9), %v1234_v3  ;;  %1158 = vmatprep.subr.bf16.mxu0 (!%p242_p9), %v1241_v34 }
  0x15   : > { %s1667_s15 = smov (!%p274_p10, %s1011_s15), 31  ;;  %1130 = vmatprep.subr.bf16.mxu1 %v1235_v4 }
  0x16   : > { %s1012_s22 = sshll.u32 %s1667_s15, 3  ;;  %s1319_s15 = scalar_lea.vmem %s1318_s14, 4096 }
  0x17   : > { %s1484_s8 = scalar_lea.vmem %s1652_s0, %s1012_s22  ;;  %s944_s22 = sshll.u32 %s1582_s20, 4  ;;  %s1604_s22 = int_to_ptr.vmem [resolvable:$true] %s944_s22 }
  0x18   : > { %v281_v5 = vld [vmem:[%s1484_s8] sm:$0xff]  ;;  %v282_v6 = vld [vmem:[%s1484_s8 + $0x8] sm:$0xff]  ;;  %v283_v7 = vld [vmem:[%s1484_s8 + $0x10] sm:$0xff]  ;;  %1131 = vmatpush3.bf16.msra.mxu1 %v1235_v4  ;;  %p1320_p0 = scmp.lt.s32.totalorder %s1604_s22, %s1318_s14 }
  0x19   : > { %v301_v8 = vpack.c.bf16 %v282_v6, %v281_v5  ;;  %v284_v9 = vld [vmem:[%s1484_s8 + $0x18] sm:$0xff]  ;;  %v285_v10 = vld [vmem:[%s1484_s8 + $0x20] sm:$0xff]  ;;  %v286_v11 = vld [vmem:[%s1484_s8 + $0x28] sm:$0xff]  ;;  %1132 = vmatprep.subr.bf16.mxu1 %v1236_v14 }
  0x1a   : > { %v302_v12 = vpack.c.bf16 %v284_v9, %v283_v7  ;;  %v303_v13 = vpack.c.bf16 %v286_v11, %v285_v10  ;;  %v287_v15 = vld [vmem:[%s1484_s8 + $0x30] sm:$0xff]  ;;  %v288_v16 = vld [vmem:[%s1484_s8 + $0x38] sm:$0xff]  ;;  %v289_v17 = vld [vmem:[%s1484_s8 + $0x40] sm:$0xff] }
  0x1b   : > { %1110 = vmatprep.mubr.msk.bf16.mxu0 %vm328_vm0, %v301_v8  ;;  %v290_v19 = vld [vmem:[%s1484_s8 + $0x48] sm:$0xff]  ;;  %v304_v20 = vpack.c.bf16 %v288_v16, %v287_v15  ;;  %v291_v23 = vld [vmem:[%s1484_s8 + $0x50] sm:$0xff]  ;;  %v292_v24 = vld [vmem:[%s1484_s8 + $0x58] sm:$0xff] }
  0x1c   : > { %1111 = vmatmul.mubr.msk.bf16.vlgmr.msra.gmra.mrb[0].mxu0 %vm328_vm0, %v302_v12  ;;  %v305_v21 = vpack.c.bf16 %v290_v19, %v289_v17  ;;  %1133 = vmatpush3.bf16.msra.mxu1 %v1236_v14  ;;  %v293_v25 = vld [vmem:[%s1484_s8 + $0x60] sm:$0xff]  ;;  %v294_v26 = vld [vmem:[%s1484_s8 + $0x68] sm:$0xff]  ;;  %v306_v27 = vpack.c.bf16 %v292_v24, %v291_v23  ;;  %v295_v29 = vld [vmem:[%s1484_s8 + $0x70] sm:$0xff] }
  0x1d   : > { %1114 = vmatprep.mubr.msk.bf16.mxu0 %vm328_vm0, %v303_v13  ;;  %1134 = vmatprep.subr.bf16.mxu1 %v1237_v18  ;;  %v307_v28 = vpack.c.bf16 %v294_v26, %v293_v25  ;;  %v296_v30 = vld [vmem:[%s1484_s8 + $0x78] sm:$0xff]  ;;  %s1313_s8 = scalar_lea.vmem %s1604_s22, 2048 }
  0x1e   : > { %v308_v31 = vpack.c.bf16 %v296_v30, %v295_v29  ;;  %1159 = vmatpush3.bf16.msra.mxu0 %v1241_v34  ;;  %v1248_v34 = vld [vmem:[%s1657_s5 + $0x38] sm:$0xff]   ;;  %p1314_p11 = scmp.ne.s32.totalorder %s1604_s22, %s1313_s8  ;;  %p1321_p1 = scmp.lt.s32.totalorder %s1319_s15, %s1313_s8 }
  0x1f   : > { %1160 = vmatprep.subr.bf16.mxu0 %v1242_v35 }
  0x20   : > { %1135 = vmatpush3.bf16.msra.mxu1 %v1237_v18  ;;  %p1315_p12 = pnand %p1314_p11, %p1458_p5  ;;  %p1322_p2 = por %p1321_p1, %p1320_p0 }
  0x21   : > { %1136 = vmatprep.subr.bf16.mxu1 %v1238_v22 }
  0x22   : > { %1161 = vmatpush3.bf16.msra.mxu0 %v1242_v35  ;;  %p1316_p13 = pneg %p1315_p12 }
  0x23   : > { %1162 = vmatprep.subr.bf16.mxu0 %v1243_v36 }
  0x24   : > { %1115 = vmatmul.mubr.msk.bf16.gmra.mrb[4].mxu0 %vm328_vm0, %v304_v20  ;;  %1137 = vmatpush3.bf16.msra.mxu1 %v1238_v22  ;;  %p1323_p3 = pnand %p1322_p2, %p1316_p13 }
  0x25   : > { %1118 = vmatprep.mubr.msk.bf16.mxu0 %vm328_vm0, %v305_v21  ;;  %1138 = vmatprep.subr.bf16.mxu1 %v1239_v32 }
  0x26   : > { %1163 = vmatpush3.bf16.msra.mxu0 %v1243_v36  ;;  %v1024_v36 = vld [vmem:[%s1656_s4] ss:$0 sm:$0xff] }
  0x27   : > { %1164 = vmatprep.subr.bf16.mxu0 %v1244_v37 }
  0x28   : > { %1139 = vmatpush3.bf16.msra.mxu1 %v1239_v32 }
  0x29   : > { %1140 = vmatprep.subr.bf16.mxu1 %v1240_v33 }
  0x2a   : > { %1165 = vmatpush3.bf16.msra.mxu0 %v1244_v37 }
  0x2b   : > { %1166 = vmatprep.subr.bf16.mxu0 %v1245_v38 }
  0x2c   : > { %1119 = vmatmul.mubr.msk.bf16.gmra.mrb[8].mxu0 %vm328_vm0, %v306_v27  ;;  %1141 = vmatpush3.bf16.msra.mxu1 %v1240_v33  ;;  %v1247_v33 = vld [vmem:[%s1657_s5 + $0x30] sm:$0xff]  }
  0x2d   : > { %1122 = vmatprep.mubr.msk.bf16.mxu0 %vm328_vm0, %v307_v28 }
  0x2e   : > { %1167 = vmatpush3.bf16.msra.mxu0 %v1245_v38 }
  0x2f   : > { %1168 = vmatprep.subr.bf16.mxu0 %v1246_v39 }
  0x32   : > { %1169 = vmatpush3.bf16.msra.mxu0 %v1246_v39 }
  0x33   : > { %1170 = vmatprep.subr.bf16.mxu0 %v1247_v33 }
  0x34   : > { %1123 = vmatmul.mubr.msk.bf16.gmra.mrb[12].mxu0 %vm328_vm0, %v308_v31 }
  0x36   : > { %1171 = vmatpush3.bf16.msra.mxu0 %v1247_v33 }
  0x37   : > { %1172 = vmatprep.subr.bf16.mxu0 %v1248_v34 }
  0x3a   : > { %1173 = vmatpush3.bf16.msra.mxu0 %v1248_v34 }
  0xef   : > { %v1112_v41 = vpop.f32.mrb[0].mxu0 }
  0xf0   : > { %v396_v42 = vadd.f32 %v1112_v41, %v1013_v40  ;;  %v387_v43 = vpop.f32.mrb[1].mxu0 }
  0xf1   : > { %v388_v44 = vadd.f32 %v1013_v40, %v387_v43  ;;  %v1113_v45 = vpop.f32.mrb[2].mxu0 }
  0xf2   : > { %v399_v46 = vadd.f32 %v1113_v45, %v1013_v40  ;;  %v390_v47 = vpop.f32.mrb[3].mxu0  ;;  %v452_v49 = vmax.f32 %v396_v42, 0.0 }
  0xf3   : > { %v391_v48 = vadd.f32 %v1013_v40, %v390_v47  ;;  %v450_v51 = vmax.f32 %v388_v44, 0.0 }
  0xf4   : > { %v453_v50 = vmax.f32 %v399_v46, 0.0 }
  0xf5   : > { %v451_v52 = vmax.f32 %v391_v48, 0.0 }
  0xf6   : > { %v483_v53 = vpack.c.bf16 %v453_v50, %v452_v49 }
  0xf7   : > { %v1116_v54 = vpop.f32.mrb[4].mxu0  ;;  %v482_v55 = vpack.c.bf16 %v451_v52, %v450_v51 }
  0xf8   : > { %v412_v56 = vadd.f32 %v1116_v54, %v1013_v40  ;;  %v403_v57 = vpop.f32.mrb[5].mxu0 }
  0xf9   : > { %v404_v58 = vadd.f32 %v1013_v40, %v403_v57  ;;  %v1117_v59 = vpop.f32.mrb[6].mxu0  ;;  %1142 = vmatprep.mubr.bf16.mxu1 %v482_v55 }
  0xfa   : > { %v415_v60 = vadd.f32 %v1117_v59, %v1013_v40  ;;  %v406_v61 = vpop.f32.mrb[7].mxu0  ;;  %1143 = vmatmul.mubr.bf16.vlgmr.msra.gmra.mrb[0].mxu1 %v483_v53  ;;  %v456_v63 = vmax.f32 %v412_v56, 0.0 }
  0xfb   : > { %v407_v62 = vadd.f32 %v1013_v40, %v406_v61  ;;  %v454_v1 = vmax.f32 %v404_v58, 0.0 }
  0xfc   : > { %v457_v0 = vmax.f32 %v415_v60, 0.0 }
  0xfd   : > { %v455_v2 = vmax.f32 %v407_v62, 0.0 }
  0xfe   : > { %v485_v3 = vpack.c.bf16 %v457_v0, %v456_v63 }
  0xff   : > { %v484_v4 = vpack.c.bf16 %v455_v2, %v454_v1  ;;  %v1120_v5 = vpop.f32.mrb[8].mxu0 }
 0x100   : > { %v428_v6 = vadd.f32 %v1120_v5, %v1013_v40  ;;  %v419_v7 = vpop.f32.mrb[9].mxu0 }
 0x101   : > { %v420_v8 = vadd.f32 %v1013_v40, %v419_v7  ;;  %v1121_v9 = vpop.f32.mrb[10].mxu0  ;;  %1146 = vmatprep.mubr.bf16.mxu1 %v484_v4 }
 0x102   : > { %v431_v10 = vadd.f32 %v1121_v9, %v1013_v40  ;;  %v422_v11 = vpop.f32.mrb[11].mxu0  ;;  %1147 = vmatmul.mubr.bf16.gmra.mrb[4].mxu1 %v485_v3  ;;  %v460_v13 = vmax.f32 %v428_v6, 0.0 }
 0x103   : > { %v423_v12 = vadd.f32 %v1013_v40, %v422_v11  ;;  %v458_v15 = vmax.f32 %v420_v8, 0.0 }
 0x104   : > { %v461_v14 = vmax.f32 %v431_v10, 0.0 }
 0x105   : > { %v459_v16 = vmax.f32 %v423_v12, 0.0  ;;  %v1561_v12 = vld [vmem:[%s1658_s6] ss:$0 sm:$0xff] }
 0x106   : > { %v487_v17 = vpack.c.bf16 %v461_v14, %v460_v13 }
 0x107   : > { %v486_v18 = vpack.c.bf16 %v459_v16, %v458_v15  ;;  %v1124_v19 = vpop.f32.mrb[12].mxu0 }
 0x108   : > { %v444_v20 = vadd.f32 %v1124_v19, %v1013_v40  ;;  %v435_v21 = vpop.f32.mrb[13].mxu0 }
 0x109   : > { %v436_v22 = vadd.f32 %v1013_v40, %v435_v21  ;;  %v1125_v23 = vpop.f32.mrb[14].mxu0  ;;  %1150 = vmatprep.mubr.bf16.mxu1 %v486_v18 }
 0x10a   : > { %v447_v24 = vadd.f32 %v1125_v23, %v1013_v40  ;;  %v438_v25 = vpop.f32.mrb[15].mxu0  ;;  %1151 = vmatmul.mubr.bf16.gmra.mrb[8].mxu1 %v487_v17  ;;  %v464_v27 = vmax.f32 %v444_v20, 0.0 }
 0x10b   : > { %v439_v26 = vadd.f32 %v1013_v40, %v438_v25  ;;  %v462_v29 = vmax.f32 %v436_v22, 0.0 }
 0x10c   : > { %v465_v28 = vmax.f32 %v447_v24, 0.0 }
 0x10d   : > { %v463_v30 = vmax.f32 %v439_v26, 0.0 }
 0x10e   : > { %v489_v31 = vpack.c.bf16 %v465_v28, %v464_v27 }
 0x10f   : > { %v488_v32 = vpack.c.bf16 %v463_v30, %v462_v29 }
 0x111   : > { %1154 = vmatprep.mubr.bf16.mxu1 %v488_v32 }
 0x112   : > { %1155 = vmatmul.mubr.bf16.gmra.mrb[12].mxu1 %v489_v31 }
 0x1cd   : > { %v1144_v35 = vpop.f32.mrb[0].mxu1 }
 0x1ce   : > { %v579_v37 = vpop.f32.mrb[1].mxu1  ;;  %v588_v39 = vadd.f32 %v1144_v35, %v1024_v36 }
 0x1cf   : > { %v1145_v38 = vpop.f32.mrb[2].mxu1  ;;  %v580_v42 = vadd.f32 %v1024_v36, %v579_v37 }
 0x1d0   : > { %v591_v40 = vadd.f32 %v1145_v38, %v1024_v36  ;;  %v582_v41 = vpop.f32.mrb[3].mxu1 }
 0x1d1   : > { %v583_v43 = vadd.f32 %v1024_v36, %v582_v41 }
 0x1d2   : > { %v659_v44 = vpack.c.bf16 %v591_v40, %v588_v39 }
 0x1d3   : > { %v658_v45 = vpack.c.bf16 %v583_v43, %v580_v42 }
 0x1d5   : > { %v1148_v46 = vpop.f32.mrb[4].mxu1  ;;  %1174 = vmatprep.mubr.bf16.mxu0 %v658_v45 }
 0x1d6   : > { %v595_v47 = vpop.f32.mrb[5].mxu1  ;;  %1175 = vmatmul.mubr.bf16.vlgmr.msra.gmra.mrb[16].mxu0 %v659_v44  ;;  %v604_v49 = vadd.f32 %v1148_v46, %v1024_v36 }
 0x1d7   : > { %v1149_v48 = vpop.f32.mrb[6].mxu1  ;;  %v596_v52 = vadd.f32 %v1024_v36, %v595_v47 }
 0x1d8   : > { %v607_v50 = vadd.f32 %v1149_v48, %v1024_v36  ;;  %v598_v51 = vpop.f32.mrb[7].mxu1 }
 0x1d9   : > { %v599_v53 = vadd.f32 %v1024_v36, %v598_v51 }
 0x1da   : > { %v661_v54 = vpack.c.bf16 %v607_v50, %v604_v49 }
 0x1db   : > { %v660_v55 = vpack.c.bf16 %v599_v53, %v596_v52 }
 0x1dd   : > { %v1152_v56 = vpop.f32.mrb[8].mxu1  ;;  %1178 = vmatprep.mubr.bf16.mxu0 %v660_v55 }
 0x1de   : > { %v611_v57 = vpop.f32.mrb[9].mxu1  ;;  %1179 = vmatmul.mubr.bf16.gmra.mrb[20].mxu0 %v661_v54  ;;  %v620_v59 = vadd.f32 %v1152_v56, %v1024_v36 }
 0x1df   : > { %v1153_v58 = vpop.f32.mrb[10].mxu1  ;;  %v612_v62 = vadd.f32 %v1024_v36, %v611_v57 }
 0x1e0   : > { %v623_v60 = vadd.f32 %v1153_v58, %v1024_v36  ;;  %v614_v61 = vpop.f32.mrb[11].mxu1 }
 0x1e1   : > { %v615_v63 = vadd.f32 %v1024_v36, %v614_v61 }
 0x1e2   : > { %v663_v0 = vpack.c.bf16 %v623_v60, %v620_v59 }
 0x1e3   : > { %v662_v1 = vpack.c.bf16 %v615_v63, %v612_v62 }
 0x1e5   : > { %v1156_v2 = vpop.f32.mrb[12].mxu1  ;;  %1182 = vmatprep.mubr.bf16.mxu0 %v662_v1 }
 0x1e6   : > { %v627_v3 = vpop.f32.mrb[13].mxu1  ;;  %1183 = vmatmul.mubr.bf16.gmra.mrb[24].mxu0 %v663_v0  ;;  %v636_v5 = vadd.f32 %v1156_v2, %v1024_v36 }
 0x1e7   : > { %v1157_v4 = vpop.f32.mrb[14].mxu1  ;;  %v628_v8 = vadd.f32 %v1024_v36, %v627_v3 }
 0x1e8   : > { %v639_v6 = vadd.f32 %v1157_v4, %v1024_v36  ;;  %v630_v7 = vpop.f32.mrb[15].mxu1 }
 0x1e9   : > { %v631_v9 = vadd.f32 %v1024_v36, %v630_v7 }
 0x1ea   : > { %v665_v10 = vpack.c.bf16 %v639_v6, %v636_v5 }
 0x1eb   : > { %v664_v11 = vpack.c.bf16 %v631_v9, %v628_v8 }
 0x1ed   : > { %1186 = vmatprep.mubr.bf16.mxu0 %v664_v11 }
 0x1ee   : > { %1187 = vmatmul.mubr.bf16.gmra.mrb[28].mxu0 %v665_v10 }
 0x2a9   : > { %v1176_v13 = vpop.f32.mrb[16].mxu0 }
 0x2aa   : > { %v764_v14 = vadd.f32 %v1176_v13, %v1561_v12  ;;  %v755_v15 = vpop.f32.mrb[17].mxu0 }
 0x2ab   : > { %v756_v16 = vadd.f32 %v1561_v12, %v755_v15  ;;  %v1177_v17 = vpop.f32.mrb[18].mxu0 }
 0x2ac   : > { %v1044_v18 = vmul.f32 -1.442695, %v764_v14  ;;  %v767_v19 = vadd.f32 %v1177_v17, %v1561_v12  ;;  %v758_v20 = vpop.f32.mrb[19].mxu0 }
 0x2ad   : > { %v1042_v21 = vmul.f32 -1.442695, %v756_v16  ;;  %v759_v22 = vadd.f32 %v1561_v12, %v758_v20 }
 0x2ae   : > { %1249 = vpow2.f32 %v1044_v18  ;;  %v1045_v23 = vmul.f32 -1.442695, %v767_v19 }
 0x2af   : > { %1251 = vpow2.f32 %v1042_v21  ;;  %v1043_v24 = vmul.f32 -1.442695, %v759_v22 }
 0x2b0   : > { %1253 = vpow2.f32 %v1045_v23 }
 0x2b1   : > { %1255 = vpow2.f32 %v1043_v24  ;;  %v1180_v25 = vpop.f32.mrb[20].mxu0 }
 0x2b2   : > { %v780_v26 = vadd.f32 %v1180_v25, %v1561_v12  ;;  %v771_v27 = vpop.f32.mrb[21].mxu0 }
 0x2b3   : > { %v772_v28 = vadd.f32 %v1561_v12, %v771_v27  ;;  %v1181_v29 = vpop.f32.mrb[22].mxu0 }
 0x2b4   : > { %v1048_v30 = vmul.f32 -1.442695, %v780_v26  ;;  %v783_v31 = vadd.f32 %v1181_v29, %v1561_v12  ;;  %v774_v32 = vpop.f32.mrb[23].mxu0 }
 0x2b5   : > { %v1046_v33 = vmul.f32 -1.442695, %v772_v28  ;;  %v775_v34 = vadd.f32 %v1561_v12, %v774_v32 }
 0x2b6   : > { %1257 = vpow2.f32 %v1048_v30  ;;  %v1049_v35 = vmul.f32 -1.442695, %v783_v31 }
 0x2b7   : > { %1259 = vpow2.f32 %v1046_v33  ;;  %v1047_v36 = vmul.f32 -1.442695, %v775_v34 }
 0x2b8   : > { %v1250_v37 = vpop.eup %1249  ;;  %1261 = vpow2.f32 %v1049_v35 }
 0x2b9   : > { %v1252_v38 = vpop.eup %1251  ;;  %v868_v39 = vadd.f32 1.0, %v1250_v37  ;;  %1263 = vpow2.f32 %v1047_v36  ;;  %v1184_v40 = vpop.f32.mrb[24].mxu0 }
 0x2ba   : > { %v1254_v41 = vpop.eup %1253  ;;  %v866_v42 = vadd.f32 1.0, %v1252_v38  ;;  %v796_v43 = vadd.f32 %v1184_v40, %v1561_v12  ;;  %v787_v44 = vpop.f32.mrb[25].mxu0 }
 0x2bb   : > { %v1256_v45 = vpop.eup %1255  ;;  %1265 = vrcp.f32 %v868_v39  ;;  %v869_v46 = vadd.f32 1.0, %v1254_v41  ;;  %v788_v47 = vadd.f32 %v1561_v12, %v787_v44  ;;  %v1185_v48 = vpop.f32.mrb[26].mxu0 }
 0x2bc   : > { %1267 = vrcp.f32 %v866_v42  ;;  %v867_v49 = vadd.f32 1.0, %v1256_v45  ;;  %v1052_v50 = vmul.f32 -1.442695, %v796_v43  ;;  %v799_v51 = vadd.f32 %v1185_v48, %v1561_v12  ;;  %v790_v52 = vpop.f32.mrb[27].mxu0 }
 0x2bd   : > { %1269 = vrcp.f32 %v869_v46  ;;  %v1050_v53 = vmul.f32 -1.442695, %v788_v47  ;;  %v791_v54 = vadd.f32 %v1561_v12, %v790_v52 }
 0x2be   : > { %1271 = vrcp.f32 %v867_v49  ;;  %v1053_v55 = vmul.f32 -1.442695, %v799_v51 }
 0x2bf   : > { %1273 = vpow2.f32 %v1052_v50  ;;  %v1051_v56 = vmul.f32 -1.442695, %v791_v54 }
 0x2c0   : > { %v1258_v57 = vpop.eup %1257  ;;  %1275 = vpow2.f32 %v1050_v53 }
 0x2c1   : > { %v1260_v58 = vpop.eup %1259  ;;  %v872_v59 = vadd.f32 1.0, %v1258_v57  ;;  %1277 = vpow2.f32 %v1053_v55  ;;  %v1188_v60 = vpop.f32.mrb[28].mxu0 }
 0x2c2   : > { %v1262_v61 = vpop.eup %1261  ;;  %v870_v62 = vadd.f32 1.0, %v1260_v58  ;;  %1279 = vpow2.f32 %v1051_v56  ;;  %v812_v63 = vadd.f32 %v1188_v60, %v1561_v12  ;;  %v803_v0 = vpop.f32.mrb[29].mxu0 }
 0x2c3   : > { %v1264_v1 = vpop.eup %1263  ;;  %1281 = vrcp.f32 %v872_v59  ;;  %v873_v2 = vadd.f32 1.0, %v1262_v61  ;;  %v804_v3 = vadd.f32 %v1561_v12, %v803_v0  ;;  %v1189_v4 = vpop.f32.mrb[30].mxu0 }
 0x2c4   : > { %1283 = vrcp.f32 %v870_v62  ;;  %v871_v5 = vadd.f32 1.0, %v1264_v1  ;;  %v1056_v6 = vmul.f32 -1.442695, %v812_v63  ;;  %v815_v7 = vadd.f32 %v1189_v4, %v1561_v12  ;;  %v806_v8 = vpop.f32.mrb[31].mxu0 }
 0x2c5   : > { %v1266_v9 = vpop.eup %1265  ;;  %1285 = vrcp.f32 %v873_v2  ;;  %v1054_v10 = vmul.f32 -1.442695, %v804_v3  ;;  %v807_v11 = vadd.f32 %v1561_v12, %v806_v8 }
 0x2c6   : > { %v1268_v13 = vpop.eup %1267  ;;  %916 = vst [vmem:[%s1582_s20 + $0x10] sm:$0xff] %v1266_v9  ;;  %1287 = vrcp.f32 %v871_v5  ;;  %v1057_v14 = vmul.f32 -1.442695, %v815_v7 }
 0x2c7   : > { %v1270_v15 = vpop.eup %1269  ;;  %914 = vst [vmem:[%s1582_s20] sm:$0xff] %v1268_v13  ;;  %1289 = vpow2.f32 %v1056_v6  ;;  %v1055_v16 = vmul.f32 -1.442695, %v807_v11 }
 0x2c8   : > { %v1272_v17 = vpop.eup %1271  ;;  %917 = vst [vmem:[%s1582_s20 + $0x18] sm:$0xff] %v1270_v15  ;;  %1291 = vpow2.f32 %v1054_v10 }
 0x2c9   : > { %v1274_v18 = vpop.eup %1273  ;;  %915 = vst [vmem:[%s1582_s20 + $0x8] sm:$0xff] %v1272_v17  ;;  %1293 = vpow2.f32 %v1057_v14 }
 0x2ca   : > { %v1276_v12 = vpop.eup %1275  ;;  %v876_v19 = vadd.f32 1.0, %v1274_v18  ;;  %1295 = vpow2.f32 %v1055_v16 }
 0x2cb   : > { %v1278_v20 = vpop.eup %1277  ;;  %v874_v21 = vadd.f32 1.0, %v1276_v12 }
 0x2cc   : > { %v1280_v22 = vpop.eup %1279  ;;  %1297 = vrcp.f32 %v876_v19  ;;  %v877_v23 = vadd.f32 1.0, %v1278_v20 }
 0x2cd   : > { %v1282_v24 = vpop.eup %1281  ;;  %1299 = vrcp.f32 %v874_v21  ;;  %v875_v25 = vadd.f32 1.0, %v1280_v22 }
 0x2ce   : > { %v1284_v26 = vpop.eup %1283  ;;  %920 = vst [vmem:[%s1582_s20 + $0x30] sm:$0xff] %v1282_v24  ;;  %1301 = vrcp.f32 %v877_v23 }
 0x2cf   : > { %v1286_v27 = vpop.eup %1285  ;;  %918 = vst [vmem:[%s1582_s20 + $0x20] sm:$0xff] %v1284_v26  ;;  %1303 = vrcp.f32 %v875_v25 }
 0x2d0   : > { %v1288_v28 = vpop.eup %1287  ;;  %921 = vst [vmem:[%s1582_s20 + $0x38] sm:$0xff] %v1286_v27 }
 0x2d1   : > { %v1290_v29 = vpop.eup %1289  ;;  %919 = vst [vmem:[%s1582_s20 + $0x28] sm:$0xff] %v1288_v28 }
 0x2d2   : > { %v1292_v30 = vpop.eup %1291  ;;  %v880_v31 = vadd.f32 1.0, %v1290_v29 }
 0x2d3   : > { %v1294_v32 = vpop.eup %1293  ;;  %v878_v33 = vadd.f32 1.0, %v1292_v30 }
 0x2d4   : > { %v1296_v34 = vpop.eup %1295  ;;  %1305 = vrcp.f32 %v880_v31  ;;  %v881_v35 = vadd.f32 1.0, %v1294_v32 }
 0x2d5   : > { %1307 = vrcp.f32 %v878_v33  ;;  %v879_v36 = vadd.f32 1.0, %v1296_v34 }
 0x2d6   : > { %v1298_v37 = vpop.eup %1297  ;;  %1309 = vrcp.f32 %v881_v35 }
 0x2d7   : > { %v1300_v38 = vpop.eup %1299  ;;  %924 = vst [vmem:[%s1582_s20 + $0x50] sm:$0xff] %v1298_v37  ;;  %1311 = vrcp.f32 %v879_v36 }
 0x2d8   : > { %v1302_v39 = vpop.eup %1301  ;;  %922 = vst [vmem:[%s1582_s20 + $0x40] sm:$0xff] %v1300_v38 }
 0x2d9   : > { %v1304_v40 = vpop.eup %1303  ;;  %925 = vst [vmem:[%s1582_s20 + $0x58] sm:$0xff] %v1302_v39 }
 0x2da   : > { %923 = vst [vmem:[%s1582_s20 + $0x48] sm:$0xff] %v1304_v40 }
 0x2de   : > { %v1306_v41 = vpop.eup %1305 }
 0x2df   : > { %v1308_v42 = vpop.eup %1307  ;;  %928 = vst [vmem:[%s1582_s20 + $0x70] sm:$0xff] %v1306_v41 }
 0x2e0   : > { %v1310_v43 = vpop.eup %1309  ;;  %926 = vst [vmem:[%s1582_s20 + $0x60] sm:$0xff] %v1308_v42 }
 0x2e1   : > { %v1312_v44 = vpop.eup %1311  ;;  %929 = vst [vmem:[%s1582_s20 + $0x78] sm:$0xff] %v1310_v43 }
 0x2e2   : > { %927 = vst [vmem:[%s1582_s20 + $0x68] sm:$0xff] %v1312_v44 }
 0x2e3   : > { %1326 = shalt.err (!%p1323_p3)
}
 0x2e4   : > { %s1327_s16 = scalar_lea.hbm %s1602_s9, 2048  ;;  %s1331_s19 = scalar_lea.hbm %s1659_s7, 4096 }
 0x2e5   : > { %p1328_p4 = scmp.ne.s32.totalorder %s1602_s9, %s1327_s16  ;;  %p1332_p9 = scmp.lt.u32.totalorder %s1602_s9, %s1659_s7 }
 0x2e6   : > { %p1333_p10 = scmp.lt.u32.totalorder %s1331_s19, %s1327_s16  ;;  %p1335_p12 = scmp.lt.u32.totalorder %s1327_s16, %s1602_s9 }
 0x2e7   : > { %p1329_p7 = pnand %p1328_p4, %p1458_p5 }
 0x2e8   : > { %p1334_p11 = por %p1333_p10, %p1332_p9 }
 0x2e9   : > { %p1330_p8 = pneg %p1329_p7 }
 0x2ea   : > { %p1336_p13 = por %p1335_p12, %p1334_p11 }
 0x2ec   : > { %p1337_p0 = pnand %p1336_p13, %p1330_p8 }
 0x2ee   : > { %1340 = shalt.err (!%p1337_p0)
}
 0x2ef   : > { %s1378_s23 = smov 128   ;;  %s1379_s29 = smov 8  }
 0x2f0   : > { %1190 = dma.vmem_to_hbm [thread:$0]  (%p1458_p5), %s1604_s22, 2048, %s1602_s9, %s1611_s28, %s1378_s23, %s1378_s23, %s1379_s29  }
 0x2f1 PF: > { %p1196_p1 = scmp.ge.s32.totalorder %s1375_s27, 2  ;;  %s959_s8 = sand.u32 1, %s1363_s24  }
 0x2f2   : > { %s960_s13 = scalar_lea.sflag [#allocation3], %s959_s8 }
 0x2f3   : > { %p1193_p2 = pnand %p1196_p1, %p1462_p6 }
 0x2f5   : > { %1358 = dma.done.wait (!%p1193_p2), %s960_s13, 2048  }
 0x2f6   : > { %1360 = vsyncadd (!%p1193_p2), %s960_s13, 4294965248  ;;  %p17_p3 = scmp.ge.s32.totalorder %s1445_s30, 4   ;;  %s1662_s24 = smov %s1367_s25 }
 0x2f7   : > { %s1663_s25 = smov %s1371_s26  ;;  %s1664_s26 = smov %s1456_s10 }
 0x2f8   : > { %s1665_s27 = smov %s1445_s30  ;;  %19 = sbr.rel (!%p17_p3) target bundleno = 3 (0x3), region = 83 }
 0x2ff   :  { %965 = vsyncpa [#allocation3], 1 }
 0x300   :  { %967 = vsyncpa [#allocation3 + $0x1], 1 }

</bundles_post_ra>
